<compile_context>
chip_gen: v7x
topology: tpu7x:2x2x1
jax: 0.10.0
libtpu: 0.0.40
codegen_flags: <defaults>
</compile_context>

<pallas_src>
import functools
import math

import jax
import jax.numpy as jnp
import numpy as np
from jax.experimental import pallas as pl
from jax.experimental.pallas import tpu as pltpu


def _layernorm(x, w, b, eps=1e-5):
    mu = jnp.mean(x, axis=-1, keepdims=True)
    var = jnp.mean((x - mu) ** 2, axis=-1, keepdims=True)
    return (x - mu) * jax.lax.rsqrt(var + eps) * w + b


def _gelu(x):
    # PyTorch nn.GELU() default = exact (erf) form.
    return 0.5 * x * (1.0 + jax.lax.erf(x * (1.0 / math.sqrt(2.0))))


def block_kernel(xf_ref, xt_ref, ln1w_ref, ln1b_ref, wqkv_ref, wp_ref, bp_ref,
                 ln2w_ref, ln2b_ref, w1_ref, b1_ref, w2_ref, b2_ref,
                 y_ref, attn_ref,
                 q_scr, k_scr, v_scr,
                 *, n_head, head_dim, tq, nq):
    f32 = jnp.float32
    bf16 = jnp.bfloat16
    L = xf_ref.shape[1]
    C = xf_ref.shape[2]
    D = head_dim
    qi = pl.program_id(1)

    # ---- once per batch element: LN1 over the full sequence + ONE fused
    #      (L, C) @ (C, 3C) QKV projection, split into per-head VMEM scratch ----
    @pl.when(qi == 0)
    def _():
        xf = xf_ref[0]                                               # (L, C) f32
        hf = _layernorm(xf, ln1w_ref[0], ln1b_ref[0]).astype(bf16)   # (L, C)
        qkv = jnp.dot(hf, wqkv_ref[...],
                      preferred_element_type=f32).astype(bf16)       # (L, 3C)
        for h in range(n_head):
            k_scr[h] = qkv[:, C + h * D:C + (h + 1) * D]             # (L, D)
            v_scr[h] = qkv[:, 2 * C + h * D:2 * C + (h + 1) * D]     # (L, D)
            for t in range(nq):                                      # per-tile Q slabs
                q_scr[t, h] = qkv[t * tq:(t + 1) * tq, h * D:(h + 1) * D]

    # ---- attention for this query tile (Q already scaled by 1/sqrt(D)) -------
    q_t = q_scr[qi]                                                  # (H, tq, D) bf16
    k = k_scr[...]                                                   # (H, L, D) bf16
    v = v_scr[...]                                                   # (H, L, D) bf16

    att = jnp.einsum('hqd,hkd->hqk', q_t, k,
                     preferred_element_type=f32)                     # (H, tq, L)
    qs = qi * tq
    row = jax.lax.broadcasted_iota(jnp.int32, (tq, L), 0) + qs
    col = jax.lax.broadcasted_iota(jnp.int32, (tq, L), 1)
    bias = jnp.where(row >= col, f32(0.0), f32(-jnp.inf))            # (tq, L)
    att = att + bias[None, :, :]
    attn_ref[0] = att.astype(attn_ref.dtype)                         # masked pre-softmax logits

    # f32 online-stable softmax; reciprocal goes to the (otherwise idle) EUP slot.
    m = jnp.max(att, axis=-1, keepdims=True)
    e = jnp.exp(att - m)
    p = e * pl.reciprocal(jnp.sum(e, axis=-1, keepdims=True), approx=True)

    y_h = jnp.einsum('hqk,hkd->hqd', p.astype(bf16), v,
                     preferred_element_type=f32).astype(bf16)        # (H, tq, D)

    # merge heads -> (tq, C); single C-deep output projection (MXU-friendly).
    y_m = jnp.concatenate([y_h[h] for h in range(n_head)], axis=-1)  # (tq, C) bf16
    y_att = jnp.dot(y_m, wp_ref[...], preferred_element_type=f32) + bp_ref[0]

    # attn_drop / resid_drop are identity in eval mode.
    x_t = xt_ref[0]                                                  # (tq, C) f32
    x1 = x_t + y_att                                                 # residual 1

    # ---- LN2 + MLP (pre-transposed weights, bf16 MXU, f32 GELU) --------------
    h2 = _layernorm(x1, ln2w_ref[0], ln2b_ref[0])
    a1 = jnp.dot(h2.astype(bf16), w1_ref[...], preferred_element_type=f32) + b1_ref[0]
    a2 = jnp.dot(_gelu(a1).astype(bf16), w2_ref[...], preferred_element_type=f32) + b2_ref[0]
    y_ref[0] = x1 + a2                                               # residual 2


def _choose_tq(L, C, n_head, attn_itemsize):
    """Largest query-tile size whose per-step attention state fits a v7x-sized
    (64 MiB) VMEM budget.  Falls back to the full sequence for small L."""
    del C
    if L <= 128 or L % 8 != 0:
        return L
    budget = 40 * 1024 * 1024
    for cand in (512, 256, 128, 64, 32, 16, 8):
        if cand <= L and L % cand == 0:
            # att / e / p in f32 + double-buffered logits output block.
            work = (3 * 4 + 2 * attn_itemsize) * n_head * cand * L
            if work <= budget:
                return cand
    return 8


def _vmem_limit_bytes(L, C, n_head, tq, attn_itemsize):
    """Explicit scoped-VMEM request sized from the actual tile footprint,
    clamped to [32 MiB, 64 MiB] so it is also valid on v7x (64 MiB / TC)."""
    head_dim = C // n_head
    weights = 2 * (12 * C * C)                               # bf16 wqkv/wp/w1/w2 (single-buffered)
    scratch = 3 * n_head * L * head_dim * 2                  # q/k/v bf16 scratch
    io = (2 * L * C * 4                                      # x_full (2 bufs)
          + 4 * tq * C * 4                                   # x_tile + y blocks (2 bufs each)
          + 2 * n_head * tq * L * attn_itemsize)             # attn-logits out block (2 bufs)
    live = (3 * n_head * tq * L * 4                          # att / e / p
            + 3 * L * C * 4                                  # fused qkv result at qi == 0
            + 2 * tq * 4 * C * 4)                            # MLP hidden
    need = weights + scratch + io + live
    return int(min(max(2 * need, 32 * 1024 * 1024), 64 * 1024 * 1024))


def block_forward(x, params, n_head, *, tq=None, attn_dtype=jnp.float32):
    B, L, C = x.shape
    head_dim = C // n_head
    ln1w, ln1b, wk, wq, wv, wp, bp, ln2w, ln2b, w1, b1, w2, b2 = params
    bf16 = jnp.bfloat16
    scale = 1.0 / math.sqrt(head_dim)

    # Host-side weight prep (free): fuse Q/K/V into one (C, 3C) matmul with the
    # attention scale folded into the Q columns; pre-transpose everything so the
    # kernel never transposes weights.
    wqkv = jnp.concatenate([wq.T * scale, wk.T, wv.T], axis=1).astype(bf16)  # (C, 3C)
    wp_t = wp.T.astype(bf16)                                                 # (C, C)
    w1_t = w1.T.astype(bf16)                                                 # (C, 4C)
    w2_t = w2.T.astype(bf16)                                                 # (4C, C)

    wargs = (
        ln1w.reshape(1, C), ln1b.reshape(1, C),
        wqkv, wp_t, bp.reshape(1, C),
        ln2w.reshape(1, C), ln2b.reshape(1, C),
        w1_t, b1.reshape(1, 4 * C),
        w2_t, b2.reshape(1, C),
    )

    attn_itemsize = jnp.dtype(attn_dtype).itemsize
    if tq is None:
        tq = _choose_tq(L, C, n_head, attn_itemsize)
    assert L % tq == 0, (L, tq)
    nq = L // tq
    vmem_limit = _vmem_limit_bytes(L, C, n_head, tq, attn_itemsize)

    kernel = functools.partial(block_kernel, n_head=n_head, head_dim=head_dim,
                               tq=tq, nq=nq)

    def build(buffer_weights):
        def wspec(a):
            nd = a.ndim
            imap = lambda b, q: (0,) * nd
            if buffer_weights:
                # Constant across the grid -> no double buffering (halves weight VMEM).
                return pl.BlockSpec(a.shape, imap, pipeline_mode=pl.Buffered(1))
            return pl.BlockSpec(a.shape, imap)

        return pl.pallas_call(
            kernel,
            out_shape=(
                jax.ShapeDtypeStruct((B, L, C), jnp.float32),
                jax.ShapeDtypeStruct((B, n_head, L, L), attn_dtype),
            ),
            grid=(B, nq),
            in_specs=[pl.BlockSpec((1, L, C), lambda b, q: (b, 0, 0)),    # full seq (for K/V/Q)
                      pl.BlockSpec((1, tq, C), lambda b, q: (b, q, 0))]   # query tile
                     + [wspec(a) for a in wargs],
            out_specs=(
                pl.BlockSpec((1, tq, C), lambda b, q: (b, q, 0)),
                pl.BlockSpec((1, n_head, tq, L), lambda b, q: (b, 0, q, 0)),
            ),
            scratch_shapes=[
                pltpu.VMEM((nq, n_head, tq, head_dim), bf16),   # Q (per-tile slabs)
                pltpu.VMEM((n_head, L, head_dim), bf16),        # K
                pltpu.VMEM((n_head, L, head_dim), bf16),        # V
            ],
            compiler_params=pltpu.CompilerParams(
                dimension_semantics=("parallel", "arbitrary"),
                vmem_limit_bytes=vmem_limit),
        )

    # Try single-buffered (Buffered(1)) weight specs first; fall back to default
    # double-buffered specs if this JAX/Mosaic build rejects pipeline_mode.
    last_err = None
    for buffer_weights in (True, False):
        try:
            y, attn = build(buffer_weights)(x, x, *wargs)
            jax.block_until_ready((y, attn))
            return y, attn
        except Exception as e:  # pragma: no cover - only hit if Buffered(1) unsupported
            last_err = e
    raise last_err


def ref_forward(x, params, n_head):
    """Pure-JAX f32 reference mirroring the PyTorch module (eval mode)."""
    ln1w, ln1b, wk, wq, wv, wp, bp, ln2w, ln2b, w1, b1, w2, b2 = params
    B, L, C = x.shape
    hd = C // n_head

    def ln(z, w, b):
        mu = z.mean(-1, keepdims=True)
        var = ((z - mu) ** 2).mean(-1, keepdims=True)
        return (z - mu) / jnp.sqrt(var + 1e-5) * w + b

    h = ln(x, ln1w, ln1b)
    q = (h @ wq.T).reshape(B, L, n_head, hd).transpose(0, 2, 1, 3)
    k = (h @ wk.T).reshape(B, L, n_head, hd).transpose(0, 2, 1, 3)
    v = (h @ wv.T).reshape(B, L, n_head, hd).transpose(0, 2, 1, 3)
    att = q @ k.transpose(0, 1, 3, 2) / math.sqrt(hd)
    mask = jnp.tril(jnp.ones((L, L)))
    att = jnp.where(mask == 0, -jnp.inf, att)
    attn_save = att
    p = jax.nn.softmax(att, axis=-1)
    y = (p @ v).transpose(0, 2, 1, 3).reshape(B, L, C)
    y = y @ wp.T + bp
    x1 = x + y
    h2 = ln(x1, ln2w, ln2b)
    h2 = h2 @ w1.T + b1
    h2 = 0.5 * h2 * (1.0 + jax.lax.erf(h2 / jnp.sqrt(2.0)))
    h2 = h2 @ w2.T + b2
    return x1 + h2, attn_save


def _run_case(key, B, L, C, n_head, tq=None):
    keys = jax.random.split(key, 12)
    x = jax.random.normal(keys[0], (B, L, C), dtype=jnp.float32)
    w = 0.02
    params = (
        1.0 + 0.1 * jax.random.normal(keys[1], (C,), jnp.float32),     # ln1 weight
        0.1 * jax.random.normal(keys[2], (C,), jnp.float32),           # ln1 bias
        w * jax.random.normal(keys[3], (C, C), jnp.float32),           # key W
        w * jax.random.normal(keys[4], (C, C), jnp.float32),           # query W
        w * jax.random.normal(keys[5], (C, C), jnp.float32),           # value W
        w * jax.random.normal(keys[6], (C, C), jnp.float32),           # proj W
        0.1 * jax.random.normal(keys[7], (C,), jnp.float32),           # proj b
        1.0 + 0.1 * jax.random.normal(keys[8], (C,), jnp.float32),     # ln2 weight
        0.1 * jax.random.normal(keys[9], (C,), jnp.float32),           # ln2 bias
        w * jax.random.normal(keys[10], (4 * C, C), jnp.float32),      # mlp W1
        jnp.zeros((4 * C,), jnp.float32),                              # mlp b1
        w * jax.random.normal(keys[11], (C, 4 * C), jnp.float32),      # mlp W2
        jnp.zeros((C,), jnp.float32),                                  # mlp b2
    )

    y, attn = block_forward(x, params, n_head, tq=tq)
    jax.block_until_ready((y, attn))

    y_exp, attn_exp = ref_forward(x, params, n_head)
    # bf16 MXU inputs (f32 accumulation) -> loosened tolerances vs f32 reference.
    assert np.allclose(np.asarray(y), np.asarray(y_exp), rtol=2e-2, atol=2e-2)
    assert np.allclose(np.asarray(attn), np.asarray(attn_exp), rtol=2e-2, atol=2e-2)


if __name__ == "__main__":
    key = jax.random.PRNGKey(0)
    k1, k2 = jax.random.split(key)
    # Single q-tile case (grid = (B, 1)).
    _run_case(k1, B=2, L=8, C=32, n_head=4)
    # Multi-tile case exercising the (B, L//tq) grid, per-batch K/V/Q scratch
    # reuse under pl.when(qi == 0), and the per-tile causal mask.
    _run_case(k2, B=2, L=16, C=32, n_head=4, tq=8)
    print("KERNEL_OK")
</pallas_src>

<mosaic_0001>
module attributes {stable_mosaic.version = 11 : i64} {
  func.func @block_kernel(%arg0: i32, %arg1: i32, %arg2: memref<1x8x32xf32, #tpu.memory_space<vmem>>, %arg3: memref<1x8x32xf32, #tpu.memory_space<vmem>>, %arg4: memref<1x32xf32, #tpu.memory_space<vmem>>, %arg5: memref<1x32xf32, #tpu.memory_space<vmem>>, %arg6: memref<32x96xbf16, #tpu.memory_space<vmem>>, %arg7: memref<32x32xbf16, #tpu.memory_space<vmem>>, %arg8: memref<1x32xf32, #tpu.memory_space<vmem>>, %arg9: memref<1x32xf32, #tpu.memory_space<vmem>>, %arg10: memref<1x32xf32, #tpu.memory_space<vmem>>, %arg11: memref<32x128xbf16, #tpu.memory_space<vmem>>, %arg12: memref<1x128xf32, #tpu.memory_space<vmem>>, %arg13: memref<128x32xbf16, #tpu.memory_space<vmem>>, %arg14: memref<1x32xf32, #tpu.memory_space<vmem>>, %arg15: memref<1x8x32xf32, #tpu.memory_space<vmem>>, %arg16: memref<1x4x8x8xf32, #tpu.memory_space<vmem>>, %arg17: memref<1x4x8x8xbf16, #tpu.memory_space<vmem>>, %arg18: memref<4x8x8xbf16, #tpu.memory_space<vmem>>, %arg19: memref<4x8x8xbf16, #tpu.memory_space<vmem>>) attributes {dimension_semantics = [#tpu.dimension_semantics<parallel>, #tpu.dimension_semantics<arbitrary>], iteration_bounds = array<i64: 2, 1>, scalar_prefetch = 0 : i64, scratch_operands = 3 : i64, tpu.core_type = #tpu.core_type<tc>, window_params = [{transform_indices = @transform_0, window_bounds = array<i64: 1, 8, 32>}, {transform_indices = @transform_1, window_bounds = array<i64: 1, 8, 32>}, {pipeline_mode = #tpu.pipeline_mode<synchronous>, transform_indices = @transform_2, window_bounds = array<i64: 1, 32>}, {pipeline_mode = #tpu.pipeline_mode<synchronous>, transform_indices = @transform_3, window_bounds = array<i64: 1, 32>}, {pipeline_mode = #tpu.pipeline_mode<synchronous>, transform_indices = @transform_4, window_bounds = array<i64: 32, 96>}, {pipeline_mode = #tpu.pipeline_mode<synchronous>, transform_indices = @transform_5, window_bounds = array<i64: 32, 32>}, {pipeline_mode = #tpu.pipeline_mode<synchronous>, transform_indices = @transform_6, window_bounds = array<i64: 1, 32>}, {pipeline_mode = #tpu.pipeline_mode<synchronous>, transform_indices = @transform_7, window_bounds = array<i64: 1, 32>}, {pipeline_mode = #tpu.pipeline_mode<synchronous>, transform_indices = @transform_8, window_bounds = array<i64: 1, 32>}, {pipeline_mode = #tpu.pipeline_mode<synchronous>, transform_indices = @transform_9, window_bounds = array<i64: 32, 128>}, {pipeline_mode = #tpu.pipeline_mode<synchronous>, transform_indices = @transform_10, window_bounds = array<i64: 1, 128>}, {pipeline_mode = #tpu.pipeline_mode<synchronous>, transform_indices = @transform_11, window_bounds = array<i64: 128, 32>}, {pipeline_mode = #tpu.pipeline_mode<synchronous>, transform_indices = @transform_12, window_bounds = array<i64: 1, 32>}, {transform_indices = @transform_13, window_bounds = array<i64: 1, 8, 32>}, {transform_indices = @transform_14, window_bounds = array<i64: 1, 4, 8, 8>}]} {
    %c0_i32 = arith.constant 0 : i32
    %0 = arith.cmpi eq, %arg1, %c0_i32 : i32
    %1 = arith.extui %0 : i1 to i32
    %c0_i32_0 = arith.constant 0 : i32
    %2 = arith.cmpi ne, %1, %c0_i32_0 : i32
    scf.if %2 {
      %c0_51 = arith.constant 0 : index
      %c0_52 = arith.constant 0 : index
      %c0_53 = arith.constant 0 : index
      %112 = vector.load %arg2[%c0_51, %c0_52, %c0_53] : memref<1x8x32xf32, #tpu.memory_space<vmem>>, vector<1x8x32xf32>
      %113 = vector.shape_cast %112 : vector<1x8x32xf32> to vector<8x32xf32>
      %c0_54 = arith.constant 0 : index
      %c0_55 = arith.constant 0 : index
      %114 = vector.load %arg4[%c0_54, %c0_55] : memref<1x32xf32, #tpu.memory_space<vmem>>, vector<1x32xf32>
      %115 = vector.shape_cast %114 : vector<1x32xf32> to vector<32xf32>
      %c0_56 = arith.constant 0 : index
      %c0_57 = arith.constant 0 : index
      %116 = vector.load %arg5[%c0_56, %c0_57] : memref<1x32xf32, #tpu.memory_space<vmem>>, vector<1x32xf32>
      %117 = vector.shape_cast %116 : vector<1x32xf32> to vector<32xf32>
      %cst_58 = arith.constant dense<0.000000e+00> : vector<8xf32>
      %118 = vector.multi_reduction <add>, %113, %cst_58 [1] : vector<8x32xf32> to vector<8xf32>
      %119 = vector.shape_cast %118 : vector<8xf32> to vector<8x1xf32>
      %cst_59 = arith.constant 3.200000e+01 : f32
      %120 = vector.broadcast %cst_59 : f32 to vector<8x1xf32>
      %121 = arith.divf %119, %120 : vector<8x1xf32>
      %122 = vector.broadcast %121 : vector<8x1xf32> to vector<8x32xf32>
      %123 = arith.subf %113, %122 : vector<8x32xf32>
      %124 = arith.mulf %123, %123 : vector<8x32xf32>
      %cst_60 = arith.constant dense<0.000000e+00> : vector<8xf32>
      %125 = vector.multi_reduction <add>, %124, %cst_60 [1] : vector<8x32xf32> to vector<8xf32>
      %126 = vector.shape_cast %125 : vector<8xf32> to vector<8x1xf32>
      %cst_61 = arith.constant 3.200000e+01 : f32
      %127 = vector.broadcast %cst_61 : f32 to vector<8x1xf32>
      %128 = arith.divf %126, %127 : vector<8x1xf32>
      %129 = vector.broadcast %121 : vector<8x1xf32> to vector<8x32xf32>
      %130 = arith.subf %113, %129 : vector<8x32xf32>
      %cst_62 = arith.constant 9.99999974E-6 : f32
      %131 = vector.broadcast %cst_62 : f32 to vector<8x1xf32>
      %132 = arith.addf %128, %131 : vector<8x1xf32>
      %133 = math.rsqrt %132 : vector<8x1xf32>
      %134 = vector.broadcast %133 : vector<8x1xf32> to vector<8x32xf32>
      %135 = arith.mulf %130, %134 : vector<8x32xf32>
      %136 = vector.shape_cast %115 : vector<32xf32> to vector<1x32xf32>
      %137 = vector.broadcast %136 : vector<1x32xf32> to vector<8x32xf32>
      %138 = arith.mulf %135, %137 : vector<8x32xf32>
      %139 = vector.shape_cast %117 : vector<32xf32> to vector<1x32xf32>
      %140 = vector.broadcast %139 : vector<1x32xf32> to vector<8x32xf32>
      %141 = arith.addf %138, %140 : vector<8x32xf32>
      %142 = arith.truncf %141 : vector<8x32xf32> to vector<8x32xbf16>
      %c0_63 = arith.constant 0 : index
      %c0_64 = arith.constant 0 : index
      %143 = vector.load %arg6[%c0_63, %c0_64] : memref<32x96xbf16, #tpu.memory_space<vmem>>, vector<32x96xbf16>
      %cst_65 = arith.constant dense<0.000000e+00> : vector<8x96xf32>
      %144 = tpu.matmul %142, %143, %cst_65 {dimension_numbers = #tpu.dot_dimension_numbers<[1], [0], [0], [1], [0, 0, 1, 1], [], []>} : vector<8x32xbf16>, vector<32x96xbf16>, vector<8x96xf32> -> vector<8x96xf32>
      %145 = arith.truncf %144 : vector<8x96xf32> to vector<8x96xbf16>
      %146 = vector.extract_strided_slice %145 {offsets = [0, 32], sizes = [8, 8], strides = [1, 1]} : vector<8x96xbf16> to vector<8x8xbf16>
      %c0_66 = arith.constant 0 : index
      %c0_67 = arith.constant 0 : index
      %c0_68 = arith.constant 0 : index
      %147 = vector.load %arg18[%c0_66, %c0_67, %c0_68] : memref<4x8x8xbf16, #tpu.memory_space<vmem>>, vector<1x8x8xbf16>
      %148 = vector.shape_cast %147 : vector<1x8x8xbf16> to vector<8x8xbf16>
      %149 = vector.shape_cast %146 : vector<8x8xbf16> to vector<1x8x8xbf16>
      tpu.vector_store %arg18[%c0_66, %c0_67, %c0_68], %149 {strides = array<i32>} : memref<4x8x8xbf16, #tpu.memory_space<vmem>>, vector<1x8x8xbf16>,
      %150 = vector.extract_strided_slice %145 {offsets = [0, 64], sizes = [8, 8], strides = [1, 1]} : vector<8x96xbf16> to vector<8x8xbf16>
      %c0_69 = arith.constant 0 : index
      %c0_70 = arith.constant 0 : index
      %c0_71 = arith.constant 0 : index
      %151 = vector.load %arg19[%c0_69, %c0_70, %c0_71] : memref<4x8x8xbf16, #tpu.memory_space<vmem>>, vector<1x8x8xbf16>
      %152 = vector.shape_cast %151 : vector<1x8x8xbf16> to vector<8x8xbf16>
      %153 = vector.shape_cast %150 : vector<8x8xbf16> to vector<1x8x8xbf16>
      tpu.vector_store %arg19[%c0_69, %c0_70, %c0_71], %153 {strides = array<i32>} : memref<4x8x8xbf16, #tpu.memory_space<vmem>>, vector<1x8x8xbf16>,
      %154 = vector.extract_strided_slice %145 {offsets = [0, 0], sizes = [8, 8], strides = [1, 1]} : vector<8x96xbf16> to vector<8x8xbf16>
      %c0_72 = arith.constant 0 : index
      %c0_73 = arith.constant 0 : index
      %c0_74 = arith.constant 0 : index
      %c0_75 = arith.constant 0 : index
      %155 = vector.load %arg17[%c0_72, %c0_73, %c0_74, %c0_75] : memref<1x4x8x8xbf16, #tpu.memory_space<vmem>>, vector<1x1x8x8xbf16>
      %156 = vector.shape_cast %155 : vector<1x1x8x8xbf16> to vector<8x8xbf16>
      %157 = vector.shape_cast %154 : vector<8x8xbf16> to vector<1x1x8x8xbf16>
      tpu.vector_store %arg17[%c0_72, %c0_73, %c0_74, %c0_75], %157 {strides = array<i32>} : memref<1x4x8x8xbf16, #tpu.memory_space<vmem>>, vector<1x1x8x8xbf16>,
      %158 = vector.extract_strided_slice %145 {offsets = [0, 40], sizes = [8, 8], strides = [1, 1]} : vector<8x96xbf16> to vector<8x8xbf16>
      %c1 = arith.constant 1 : index
      %c0_76 = arith.constant 0 : index
      %c0_77 = arith.constant 0 : index
      %159 = vector.load %arg18[%c1, %c0_76, %c0_77] : memref<4x8x8xbf16, #tpu.memory_space<vmem>>, vector<1x8x8xbf16>
      %160 = vector.shape_cast %159 : vector<1x8x8xbf16> to vector<8x8xbf16>
      %161 = vector.shape_cast %158 : vector<8x8xbf16> to vector<1x8x8xbf16>
      tpu.vector_store %arg18[%c1, %c0_76, %c0_77], %161 {strides = array<i32>} : memref<4x8x8xbf16, #tpu.memory_space<vmem>>, vector<1x8x8xbf16>,
      %162 = vector.extract_strided_slice %145 {offsets = [0, 72], sizes = [8, 8], strides = [1, 1]} : vector<8x96xbf16> to vector<8x8xbf16>
      %c1_78 = arith.constant 1 : index
      %c0_79 = arith.constant 0 : index
      %c0_80 = arith.constant 0 : index
      %163 = vector.load %arg19[%c1_78, %c0_79, %c0_80] : memref<4x8x8xbf16, #tpu.memory_space<vmem>>, vector<1x8x8xbf16>
      %164 = vector.shape_cast %163 : vector<1x8x8xbf16> to vector<8x8xbf16>
      %165 = vector.shape_cast %162 : vector<8x8xbf16> to vector<1x8x8xbf16>
      tpu.vector_store %arg19[%c1_78, %c0_79, %c0_80], %165 {strides = array<i32>} : memref<4x8x8xbf16, #tpu.memory_space<vmem>>, vector<1x8x8xbf16>,
      %166 = vector.extract_strided_slice %145 {offsets = [0, 8], sizes = [8, 8], strides = [1, 1]} : vector<8x96xbf16> to vector<8x8xbf16>
      %c0_81 = arith.constant 0 : index
      %c1_82 = arith.constant 1 : index
      %c0_83 = arith.constant 0 : index
      %c0_84 = arith.constant 0 : index
      %167 = vector.load %arg17[%c0_81, %c1_82, %c0_83, %c0_84] : memref<1x4x8x8xbf16, #tpu.memory_space<vmem>>, vector<1x1x8x8xbf16>
      %168 = vector.shape_cast %167 : vector<1x1x8x8xbf16> to vector<8x8xbf16>
      %169 = vector.shape_cast %166 : vector<8x8xbf16> to vector<1x1x8x8xbf16>
      tpu.vector_store %arg17[%c0_81, %c1_82, %c0_83, %c0_84], %169 {strides = array<i32>} : memref<1x4x8x8xbf16, #tpu.memory_space<vmem>>, vector<1x1x8x8xbf16>,
      %170 = vector.extract_strided_slice %145 {offsets = [0, 48], sizes = [8, 8], strides = [1, 1]} : vector<8x96xbf16> to vector<8x8xbf16>
      %c2 = arith.constant 2 : index
      %c0_85 = arith.constant 0 : index
      %c0_86 = arith.constant 0 : index
      %171 = vector.load %arg18[%c2, %c0_85, %c0_86] : memref<4x8x8xbf16, #tpu.memory_space<vmem>>, vector<1x8x8xbf16>
      %172 = vector.shape_cast %171 : vector<1x8x8xbf16> to vector<8x8xbf16>
      %173 = vector.shape_cast %170 : vector<8x8xbf16> to vector<1x8x8xbf16>
      tpu.vector_store %arg18[%c2, %c0_85, %c0_86], %173 {strides = array<i32>} : memref<4x8x8xbf16, #tpu.memory_space<vmem>>, vector<1x8x8xbf16>,
      %174 = vector.extract_strided_slice %145 {offsets = [0, 80], sizes = [8, 8], strides = [1, 1]} : vector<8x96xbf16> to vector<8x8xbf16>
      %c2_87 = arith.constant 2 : index
      %c0_88 = arith.constant 0 : index
      %c0_89 = arith.constant 0 : index
      %175 = vector.load %arg19[%c2_87, %c0_88, %c0_89] : memref<4x8x8xbf16, #tpu.memory_space<vmem>>, vector<1x8x8xbf16>
      %176 = vector.shape_cast %175 : vector<1x8x8xbf16> to vector<8x8xbf16>
      %177 = vector.shape_cast %174 : vector<8x8xbf16> to vector<1x8x8xbf16>
      tpu.vector_store %arg19[%c2_87, %c0_88, %c0_89], %177 {strides = array<i32>} : memref<4x8x8xbf16, #tpu.memory_space<vmem>>, vector<1x8x8xbf16>,
      %178 = vector.extract_strided_slice %145 {offsets = [0, 16], sizes = [8, 8], strides = [1, 1]} : vector<8x96xbf16> to vector<8x8xbf16>
      %c0_90 = arith.constant 0 : index
      %c2_91 = arith.constant 2 : index
      %c0_92 = arith.constant 0 : index
      %c0_93 = arith.constant 0 : index
      %179 = vector.load %arg17[%c0_90, %c2_91, %c0_92, %c0_93] : memref<1x4x8x8xbf16, #tpu.memory_space<vmem>>, vector<1x1x8x8xbf16>
      %180 = vector.shape_cast %179 : vector<1x1x8x8xbf16> to vector<8x8xbf16>
      %181 = vector.shape_cast %178 : vector<8x8xbf16> to vector<1x1x8x8xbf16>
      tpu.vector_store %arg17[%c0_90, %c2_91, %c0_92, %c0_93], %181 {strides = array<i32>} : memref<1x4x8x8xbf16, #tpu.memory_space<vmem>>, vector<1x1x8x8xbf16>,
      %182 = vector.extract_strided_slice %145 {offsets = [0, 56], sizes = [8, 8], strides = [1, 1]} : vector<8x96xbf16> to vector<8x8xbf16>
      %c3 = arith.constant 3 : index
      %c0_94 = arith.constant 0 : index
      %c0_95 = arith.constant 0 : index
      %183 = vector.load %arg18[%c3, %c0_94, %c0_95] : memref<4x8x8xbf16, #tpu.memory_space<vmem>>, vector<1x8x8xbf16>
      %184 = vector.shape_cast %183 : vector<1x8x8xbf16> to vector<8x8xbf16>
      %185 = vector.shape_cast %182 : vector<8x8xbf16> to vector<1x8x8xbf16>
      tpu.vector_store %arg18[%c3, %c0_94, %c0_95], %185 {strides = array<i32>} : memref<4x8x8xbf16, #tpu.memory_space<vmem>>, vector<1x8x8xbf16>,
      %186 = vector.extract_strided_slice %145 {offsets = [0, 88], sizes = [8, 8], strides = [1, 1]} : vector<8x96xbf16> to vector<8x8xbf16>
      %c3_96 = arith.constant 3 : index
      %c0_97 = arith.constant 0 : index
      %c0_98 = arith.constant 0 : index
      %187 = vector.load %arg19[%c3_96, %c0_97, %c0_98] : memref<4x8x8xbf16, #tpu.memory_space<vmem>>, vector<1x8x8xbf16>
      %188 = vector.shape_cast %187 : vector<1x8x8xbf16> to vector<8x8xbf16>
      %189 = vector.shape_cast %186 : vector<8x8xbf16> to vector<1x8x8xbf16>
      tpu.vector_store %arg19[%c3_96, %c0_97, %c0_98], %189 {strides = array<i32>} : memref<4x8x8xbf16, #tpu.memory_space<vmem>>, vector<1x8x8xbf16>,
      %190 = vector.extract_strided_slice %145 {offsets = [0, 24], sizes = [8, 8], strides = [1, 1]} : vector<8x96xbf16> to vector<8x8xbf16>
      %c0_99 = arith.constant 0 : index
      %c3_100 = arith.constant 3 : index
      %c0_101 = arith.constant 0 : index
      %c0_102 = arith.constant 0 : index
      %191 = vector.load %arg17[%c0_99, %c3_100, %c0_101, %c0_102] : memref<1x4x8x8xbf16, #tpu.memory_space<vmem>>, vector<1x1x8x8xbf16>
      %192 = vector.shape_cast %191 : vector<1x1x8x8xbf16> to vector<8x8xbf16>
      %193 = vector.shape_cast %190 : vector<8x8xbf16> to vector<1x1x8x8xbf16>
      tpu.vector_store %arg17[%c0_99, %c3_100, %c0_101, %c0_102], %193 {strides = array<i32>} : memref<1x4x8x8xbf16, #tpu.memory_space<vmem>>, vector<1x1x8x8xbf16>,
    } else {
    }
    %3 = arith.index_cast %arg1 : i32 to index
    %c0 = arith.constant 0 : index
    %c0_1 = arith.constant 0 : index
    %c0_2 = arith.constant 0 : index
    %4 = vector.load %arg17[%3, %c0, %c0_1, %c0_2] : memref<1x4x8x8xbf16, #tpu.memory_space<vmem>>, vector<1x4x8x8xbf16>
    %5 = vector.shape_cast %4 : vector<1x4x8x8xbf16> to vector<4x8x8xbf16>
    %c0_3 = arith.constant 0 : index
    %c0_4 = arith.constant 0 : index
    %c0_5 = arith.constant 0 : index
    %6 = vector.load %arg18[%c0_3, %c0_4, %c0_5] : memref<4x8x8xbf16, #tpu.memory_space<vmem>>, vector<4x8x8xbf16>
    %c0_6 = arith.constant 0 : index
    %c0_7 = arith.constant 0 : index
    %c0_8 = arith.constant 0 : index
    %7 = vector.load %arg19[%c0_6, %c0_7, %c0_8] : memref<4x8x8xbf16, #tpu.memory_space<vmem>>, vector<4x8x8xbf16>
    "tpu.trace_start"() <{level = 10 : i32, message = "hqd,hkd->hqk"}> : () -> ()
    %cst = arith.constant dense<0.000000e+00> : vector<4x8x8xf32>
    %8 = tpu.matmul %5, %6, %cst {dimension_numbers = #tpu.dot_dimension_numbers<[2], [2], [1], [1], [0, 0, 0, 1, 1, 1], [0], [0]>} : vector<4x8x8xbf16>, vector<4x8x8xbf16>, vector<4x8x8xf32> -> vector<4x8x8xf32>
    "tpu.trace_stop"() : () -> ()
    %c8_i32 = arith.constant 8 : i32
    %9 = arith.muli %arg1, %c8_i32 : i32
    %10 = tpu.iota {dimensions = array<i32: 0>} : vector<8x8xi32>
    %11 = vector.broadcast %9 : i32 to vector<8x8xi32>
    %12 = arith.addi %10, %11 : vector<8x8xi32>
    %13 = tpu.iota {dimensions = array<i32: 1>} : vector<8x8xi32>
    %14 = arith.cmpi sge, %12, %13 : vector<8x8xi32>
    %cst_9 = arith.constant 0.000000e+00 : f32
    %cst_10 = arith.constant 0xFF800000 : f32
    %15 = vector.broadcast %cst_9 : f32 to vector<8x8xf32>
    %16 = vector.broadcast %cst_10 : f32 to vector<8x8xf32>
    %17 = arith.select %14, %15, %16 : vector<8x8xi1>, vector<8x8xf32>
    %18 = vector.shape_cast %17 : vector<8x8xf32> to vector<1x8x8xf32>
    %19 = vector.broadcast %18 : vector<1x8x8xf32> to vector<4x8x8xf32>
    %20 = arith.addf %8, %19 : vector<4x8x8xf32>
    %c0_11 = arith.constant 0 : index
    %c0_12 = arith.constant 0 : index
    %c0_13 = arith.constant 0 : index
    %c0_14 = arith.constant 0 : index
    %21 = vector.load %arg16[%c0_11, %c0_12, %c0_13, %c0_14] : memref<1x4x8x8xf32, #tpu.memory_space<vmem>>, vector<1x4x8x8xf32>
    %22 = vector.shape_cast %21 : vector<1x4x8x8xf32> to vector<4x8x8xf32>
    %23 = vector.shape_cast %20 : vector<4x8x8xf32> to vector<1x4x8x8xf32>
    tpu.vector_store %arg16[%c0_11, %c0_12, %c0_13, %c0_14], %23 {strides = array<i32>} : memref<1x4x8x8xf32, #tpu.memory_space<vmem>>, vector<1x4x8x8xf32>,
    %cst_15 = arith.constant dense<0xFF800000> : vector<4x8xf32>
    %24 = vector.multi_reduction <maximumf>, %20, %cst_15 [2] : vector<4x8x8xf32> to vector<4x8xf32>
    %25 = vector.shape_cast %24 : vector<4x8xf32> to vector<4x8x1xf32>
    %26 = vector.broadcast %25 : vector<4x8x1xf32> to vector<4x8x8xf32>
    %27 = arith.subf %20, %26 : vector<4x8x8xf32>
    %28 = math.exp %27 : vector<4x8x8xf32>
    %cst_16 = arith.constant dense<0.000000e+00> : vector<4x8xf32>
    %29 = vector.multi_reduction <add>, %28, %cst_16 [2] : vector<4x8x8xf32> to vector<4x8xf32>
    %30 = vector.shape_cast %29 : vector<4x8xf32> to vector<4x8x1xf32>
    %31 = tpu.reciprocal %30 {approx = true} : vector<4x8x1xf32> -> vector<4x8x1xf32>
    %32 = vector.broadcast %31 : vector<4x8x1xf32> to vector<4x8x8xf32>
    %33 = arith.mulf %28, %32 : vector<4x8x8xf32>
    %34 = arith.truncf %33 : vector<4x8x8xf32> to vector<4x8x8xbf16>
    "tpu.trace_start"() <{level = 10 : i32, message = "hqk,hkd->hqd"}> : () -> ()
    %cst_17 = arith.constant dense<0.000000e+00> : vector<4x8x8xf32>
    %35 = tpu.matmul %34, %7, %cst_17 {dimension_numbers = #tpu.dot_dimension_numbers<[2], [1], [1], [2], [0, 0, 0, 1, 1, 2], [0], [0]>} : vector<4x8x8xbf16>, vector<4x8x8xbf16>, vector<4x8x8xf32> -> vector<4x8x8xf32>
    "tpu.trace_stop"() : () -> ()
    %36 = arith.truncf %35 : vector<4x8x8xf32> to vector<4x8x8xbf16>
    %37 = vector.extract_strided_slice %36 {offsets = [0, 0, 0], sizes = [1, 8, 8], strides = [1, 1, 1]} : vector<4x8x8xbf16> to vector<1x8x8xbf16>
    %38 = vector.shape_cast %37 : vector<1x8x8xbf16> to vector<8x8xbf16>
    %39 = vector.extract_strided_slice %36 {offsets = [1, 0, 0], sizes = [1, 8, 8], strides = [1, 1, 1]} : vector<4x8x8xbf16> to vector<1x8x8xbf16>
    %40 = vector.shape_cast %39 : vector<1x8x8xbf16> to vector<8x8xbf16>
    %41 = vector.extract_strided_slice %36 {offsets = [2, 0, 0], sizes = [1, 8, 8], strides = [1, 1, 1]} : vector<4x8x8xbf16> to vector<1x8x8xbf16>
    %42 = vector.shape_cast %41 : vector<1x8x8xbf16> to vector<8x8xbf16>
    %43 = vector.extract_strided_slice %36 {offsets = [3, 0, 0], sizes = [1, 8, 8], strides = [1, 1, 1]} : vector<4x8x8xbf16> to vector<1x8x8xbf16>
    %44 = vector.shape_cast %43 : vector<1x8x8xbf16> to vector<8x8xbf16>
    %45 = tpu.concatenate %38, %40, %42, %44 in 1 : vector<8x8xbf16>, vector<8x8xbf16>, vector<8x8xbf16>, vector<8x8xbf16> -> vector<8x32xbf16>
    %c0_18 = arith.constant 0 : index
    %c0_19 = arith.constant 0 : index
    %46 = vector.load %arg7[%c0_18, %c0_19] : memref<32x32xbf16, #tpu.memory_space<vmem>>, vector<32x32xbf16>
    %cst_20 = arith.constant dense<0.000000e+00> : vector<8x32xf32>
    %47 = tpu.matmul %45, %46, %cst_20 {dimension_numbers = #tpu.dot_dimension_numbers<[1], [0], [0], [1], [0, 0, 1, 1], [], []>} : vector<8x32xbf16>, vector<32x32xbf16>, vector<8x32xf32> -> vector<8x32xf32>
    %c0_21 = arith.constant 0 : index
    %c0_22 = arith.constant 0 : index
    %48 = vector.load %arg8[%c0_21, %c0_22] : memref<1x32xf32, #tpu.memory_space<vmem>>, vector<1x32xf32>
    %49 = vector.shape_cast %48 : vector<1x32xf32> to vector<32xf32>
    %50 = vector.shape_cast %49 : vector<32xf32> to vector<1x32xf32>
    %51 = vector.broadcast %50 : vector<1x32xf32> to vector<8x32xf32>
    %52 = arith.addf %47, %51 : vector<8x32xf32>
    %c0_23 = arith.constant 0 : index
    %c0_24 = arith.constant 0 : index
    %c0_25 = arith.constant 0 : index
    %53 = vector.load %arg3[%c0_23, %c0_24, %c0_25] : memref<1x8x32xf32, #tpu.memory_space<vmem>>, vector<1x8x32xf32>
    %54 = vector.shape_cast %53 : vector<1x8x32xf32> to vector<8x32xf32>
    %55 = arith.addf %54, %52 : vector<8x32xf32>
    %c0_26 = arith.constant 0 : index
    %c0_27 = arith.constant 0 : index
    %56 = vector.load %arg9[%c0_26, %c0_27] : memref<1x32xf32, #tpu.memory_space<vmem>>, vector<1x32xf32>
    %57 = vector.shape_cast %56 : vector<1x32xf32> to vector<32xf32>
    %c0_28 = arith.constant 0 : index
    %c0_29 = arith.constant 0 : index
    %58 = vector.load %arg10[%c0_28, %c0_29] : memref<1x32xf32, #tpu.memory_space<vmem>>, vector<1x32xf32>
    %59 = vector.shape_cast %58 : vector<1x32xf32> to vector<32xf32>
    %cst_30 = arith.constant dense<0.000000e+00> : vector<8xf32>
    %60 = vector.multi_reduction <add>, %55, %cst_30 [1] : vector<8x32xf32> to vector<8xf32>
    %61 = vector.shape_cast %60 : vector<8xf32> to vector<8x1xf32>
    %cst_31 = arith.constant 3.200000e+01 : f32
    %62 = vector.broadcast %cst_31 : f32 to vector<8x1xf32>
    %63 = arith.divf %61, %62 : vector<8x1xf32>
    %64 = vector.broadcast %63 : vector<8x1xf32> to vector<8x32xf32>
    %65 = arith.subf %55, %64 : vector<8x32xf32>
    %66 = arith.mulf %65, %65 : vector<8x32xf32>
    %cst_32 = arith.constant dense<0.000000e+00> : vector<8xf32>
    %67 = vector.multi_reduction <add>, %66, %cst_32 [1] : vector<8x32xf32> to vector<8xf32>
    %68 = vector.shape_cast %67 : vector<8xf32> to vector<8x1xf32>
    %cst_33 = arith.constant 3.200000e+01 : f32
    %69 = vector.broadcast %cst_33 : f32 to vector<8x1xf32>
    %70 = arith.divf %68, %69 : vector<8x1xf32>
    %71 = vector.broadcast %63 : vector<8x1xf32> to vector<8x32xf32>
    %72 = arith.subf %55, %71 : vector<8x32xf32>
    %cst_34 = arith.constant 9.99999974E-6 : f32
    %73 = vector.broadcast %cst_34 : f32 to vector<8x1xf32>
    %74 = arith.addf %70, %73 : vector<8x1xf32>
    %75 = math.rsqrt %74 : vector<8x1xf32>
    %76 = vector.broadcast %75 : vector<8x1xf32> to vector<8x32xf32>
    %77 = arith.mulf %72, %76 : vector<8x32xf32>
    %78 = vector.shape_cast %57 : vector<32xf32> to vector<1x32xf32>
    %79 = vector.broadcast %78 : vector<1x32xf32> to vector<8x32xf32>
    %80 = arith.mulf %77, %79 : vector<8x32xf32>
    %81 = vector.shape_cast %59 : vector<32xf32> to vector<1x32xf32>
    %82 = vector.broadcast %81 : vector<1x32xf32> to vector<8x32xf32>
    %83 = arith.addf %80, %82 : vector<8x32xf32>
    %84 = arith.truncf %83 : vector<8x32xf32> to vector<8x32xbf16>
    %c0_35 = arith.constant 0 : index
    %c0_36 = arith.constant 0 : index
    %85 = vector.load %arg11[%c0_35, %c0_36] : memref<32x128xbf16, #tpu.memory_space<vmem>>, vector<32x128xbf16>
    %cst_37 = arith.constant dense<0.000000e+00> : vector<8x128xf32>
    %86 = tpu.matmul %84, %85, %cst_37 {dimension_numbers = #tpu.dot_dimension_numbers<[1], [0], [0], [1], [0, 0, 1, 1], [], []>} : vector<8x32xbf16>, vector<32x128xbf16>, vector<8x128xf32> -> vector<8x128xf32>
    %c0_38 = arith.constant 0 : index
    %c0_39 = arith.constant 0 : index
    %87 = vector.load %arg12[%c0_38, %c0_39] : memref<1x128xf32, #tpu.memory_space<vmem>>, vector<1x128xf32>
    %88 = vector.shape_cast %87 : vector<1x128xf32> to vector<128xf32>
    %89 = vector.shape_cast %88 : vector<128xf32> to vector<1x128xf32>
    %90 = vector.broadcast %89 : vector<1x128xf32> to vector<8x128xf32>
    %91 = arith.addf %86, %90 : vector<8x128xf32>
    %cst_40 = arith.constant 5.000000e-01 : f32
    %92 = vector.broadcast %cst_40 : f32 to vector<8x128xf32>
    %93 = arith.mulf %92, %91 : vector<8x128xf32>
    %cst_41 = arith.constant 0.707106769 : f32
    %94 = vector.broadcast %cst_41 : f32 to vector<8x128xf32>
    %95 = arith.mulf %91, %94 : vector<8x128xf32>
    %96 = math.erf %95 : vector<8x128xf32>
    %cst_42 = arith.constant 1.000000e+00 : f32
    %97 = vector.broadcast %cst_42 : f32 to vector<8x128xf32>
    %98 = arith.addf %97, %96 : vector<8x128xf32>
    %99 = arith.mulf %93, %98 : vector<8x128xf32>
    %100 = arith.truncf %99 : vector<8x128xf32> to vector<8x128xbf16>
    %c0_43 = arith.constant 0 : index
    %c0_44 = arith.constant 0 : index
    %101 = vector.load %arg13[%c0_43, %c0_44] : memref<128x32xbf16, #tpu.memory_space<vmem>>, vector<128x32xbf16>
    %cst_45 = arith.constant dense<0.000000e+00> : vector<8x32xf32>
    %102 = tpu.matmul %100, %101, %cst_45 {dimension_numbers = #tpu.dot_dimension_numbers<[1], [0], [0], [1], [0, 0, 1, 1], [], []>} : vector<8x128xbf16>, vector<128x32xbf16>, vector<8x32xf32> -> vector<8x32xf32>
    %c0_46 = arith.constant 0 : index
    %c0_47 = arith.constant 0 : index
    %103 = vector.load %arg14[%c0_46, %c0_47] : memref<1x32xf32, #tpu.memory_space<vmem>>, vector<1x32xf32>
    %104 = vector.shape_cast %103 : vector<1x32xf32> to vector<32xf32>
    %105 = vector.shape_cast %104 : vector<32xf32> to vector<1x32xf32>
    %106 = vector.broadcast %105 : vector<1x32xf32> to vector<8x32xf32>
    %107 = arith.addf %102, %106 : vector<8x32xf32>
    %108 = arith.addf %55, %107 : vector<8x32xf32>
    %c0_48 = arith.constant 0 : index
    %c0_49 = arith.constant 0 : index
    %c0_50 = arith.constant 0 : index
    %109 = vector.load %arg15[%c0_48, %c0_49, %c0_50] : memref<1x8x32xf32, #tpu.memory_space<vmem>>, vector<1x8x32xf32>
    %110 = vector.shape_cast %109 : vector<1x8x32xf32> to vector<8x32xf32>
    %111 = vector.shape_cast %108 : vector<8x32xf32> to vector<1x8x32xf32>
    tpu.vector_store %arg15[%c0_48, %c0_49, %c0_50], %111 {strides = array<i32>} : memref<1x8x32xf32, #tpu.memory_space<vmem>>, vector<1x8x32xf32>,
    return
  }
  func.func @transform_0(%arg0: i32, %arg1: i32) -> (i32, i32, i32) {
    %c0_i32 = arith.constant 0 : i32
    %c0_i32_0 = arith.constant 0 : i32
    %c0_i32_1 = arith.constant 0 : i32
    return %arg0, %c0_i32, %c0_i32_0 : i32, i32, i32
  }
  func.func @transform_1(%arg0: i32, %arg1: i32) -> (i32, i32, i32) {
    %c0_i32 = arith.constant 0 : i32
    %c0_i32_0 = arith.constant 0 : i32
    return %arg0, %arg1, %c0_i32 : i32, i32, i32
  }
  func.func @transform_2(%arg0: i32, %arg1: i32) -> (i32, i32) {
    %c0_i32 = arith.constant 0 : i32
    %c0_i32_0 = arith.constant 0 : i32
    %c0_i32_1 = arith.constant 0 : i32
    return %c0_i32, %c0_i32_0 : i32, i32
  }
  func.func @transform_3(%arg0: i32, %arg1: i32) -> (i32, i32) {
    %c0_i32 = arith.constant 0 : i32
    %c0_i32_0 = arith.constant 0 : i32
    %c0_i32_1 = arith.constant 0 : i32
    return %c0_i32, %c0_i32_0 : i32, i32
  }
  func.func @transform_4(%arg0: i32, %arg1: i32) -> (i32, i32) {
    %c0_i32 = arith.constant 0 : i32
    %c0_i32_0 = arith.constant 0 : i32
    %c0_i32_1 = arith.constant 0 : i32
    return %c0_i32, %c0_i32_0 : i32, i32
  }
  func.func @transform_5(%arg0: i32, %arg1: i32) -> (i32, i32) {
    %c0_i32 = arith.constant 0 : i32
    %c0_i32_0 = arith.constant 0 : i32
    %c0_i32_1 = arith.constant 0 : i32
    return %c0_i32, %c0_i32_0 : i32, i32
  }
  func.func @transform_6(%arg0: i32, %arg1: i32) -> (i32, i32) {
    %c0_i32 = arith.constant 0 : i32
    %c0_i32_0 = arith.constant 0 : i32
    %c0_i32_1 = arith.constant 0 : i32
    return %c0_i32, %c0_i32_0 : i32, i32
  }
  func.func @transform_7(%arg0: i32, %arg1: i32) -> (i32, i32) {
    %c0_i32 = arith.constant 0 : i32
    %c0_i32_0 = arith.constant 0 : i32
    %c0_i32_1 = arith.constant 0 : i32
    return %c0_i32, %c0_i32_0 : i32, i32
  }
  func.func @transform_8(%arg0: i32, %arg1: i32) -> (i32, i32) {
    %c0_i32 = arith.constant 0 : i32
    %c0_i32_0 = arith.constant 0 : i32
    %c0_i32_1 = arith.constant 0 : i32
    return %c0_i32, %c0_i32_0 : i32, i32
  }
  func.func @transform_9(%arg0: i32, %arg1: i32) -> (i32, i32) {
    %c0_i32 = arith.constant 0 : i32
    %c0_i32_0 = arith.constant 0 : i32
    %c0_i32_1 = arith.constant 0 : i32
    return %c0_i32, %c0_i32_0 : i32, i32
  }
  func.func @transform_10(%arg0: i32, %arg1: i32) -> (i32, i32) {
    %c0_i32 = arith.constant 0 : i32
    %c0_i32_0 = arith.constant 0 : i32
    %c0_i32_1 = arith.constant 0 : i32
    return %c0_i32, %c0_i32_0 : i32, i32
  }
  func.func @transform_11(%arg0: i32, %arg1: i32) -> (i32, i32) {
    %c0_i32 = arith.constant 0 : i32
    %c0_i32_0 = arith.constant 0 : i32
    %c0_i32_1 = arith.constant 0 : i32
    return %c0_i32, %c0_i32_0 : i32, i32
  }
  func.func @transform_12(%arg0: i32, %arg1: i32) -> (i32, i32) {
    %c0_i32 = arith.constant 0 : i32
    %c0_i32_0 = arith.constant 0 : i32
    %c0_i32_1 = arith.constant 0 : i32
    return %c0_i32, %c0_i32_0 : i32, i32
  }
  func.func @transform_13(%arg0: i32, %arg1: i32) -> (i32, i32, i32) {
    %c0_i32 = arith.constant 0 : i32
    %c0_i32_0 = arith.constant 0 : i32
    return %arg0, %arg1, %c0_i32 : i32, i32, i32
  }
  func.func @transform_14(%arg0: i32, %arg1: i32) -> (i32, i32, i32, i32) {
    %c0_i32 = arith.constant 0 : i32
    %c0_i32_0 = arith.constant 0 : i32
    %c0_i32_1 = arith.constant 0 : i32
    return %arg0, %c0_i32, %arg1, %c0_i32_0 : i32, i32, i32, i32
  }
}

module attributes {stable_mosaic.version = 11 : i64} {
  func.func @block_kernel(%arg0: i32, %arg1: i32, %arg2: memref<1x8x32xf32, #tpu.memory_space<vmem>>, %arg3: memref<1x8x32xf32, #tpu.memory_space<vmem>>, %arg4: memref<1x32xf32, #tpu.memory_space<vmem>>, %arg5: memref<1x32xf32, #tpu.memory_space<vmem>>, %arg6: memref<32x96xbf16, #tpu.memory_space<vmem>>, %arg7: memref<32x32xbf16, #tpu.memory_space<vmem>>, %arg8: memref<1x32xf32, #tpu.memory_space<vmem>>, %arg9: memref<1x32xf32, #tpu.memory_space<vmem>>, %arg10: memref<1x32xf32, #tpu.memory_space<vmem>>, %arg11: memref<32x128xbf16, #tpu.memory_space<vmem>>, %arg12: memref<1x128xf32, #tpu.memory_space<vmem>>, %arg13: memref<128x32xbf16, #tpu.memory_space<vmem>>, %arg14: memref<1x32xf32, #tpu.memory_space<vmem>>, %arg15: memref<1x8x32xf32, #tpu.memory_space<vmem>>, %arg16: memref<1x4x8x8xf32, #tpu.memory_space<vmem>>, %arg17: memref<1x4x8x8xbf16, #tpu.memory_space<vmem>>, %arg18: memref<4x8x8xbf16, #tpu.memory_space<vmem>>, %arg19: memref<4x8x8xbf16, #tpu.memory_space<vmem>>) attributes {dimension_semantics = [#tpu.dimension_semantics<parallel>, #tpu.dimension_semantics<arbitrary>], iteration_bounds = array<i64: 2, 1>, scalar_prefetch = 0 : i64, scratch_operands = 3 : i64, tpu.core_type = #tpu.core_type<tc>, window_params = [{transform_indices = @transform_0, window_bounds = array<i64: 1, 8, 32>}, {transform_indices = @transform_1, window_bounds = array<i64: 1, 8, 32>}, {pipeline_mode = #tpu.pipeline_mode<synchronous>, transform_indices = @transform_2, window_bounds = array<i64: 1, 32>}, {pipeline_mode = #tpu.pipeline_mode<synchronous>, transform_indices = @transform_3, window_bounds = array<i64: 1, 32>}, {pipeline_mode = #tpu.pipeline_mode<synchronous>, transform_indices = @transform_4, window_bounds = array<i64: 32, 96>}, {pipeline_mode = #tpu.pipeline_mode<synchronous>, transform_indices = @transform_5, window_bounds = array<i64: 32, 32>}, {pipeline_mode = #tpu.pipeline_mode<synchronous>, transform_indices = @transform_6, window_bounds = array<i64: 1, 32>}, {pipeline_mode = #tpu.pipeline_mode<synchronous>, transform_indices = @transform_7, window_bounds = array<i64: 1, 32>}, {pipeline_mode = #tpu.pipeline_mode<synchronous>, transform_indices = @transform_8, window_bounds = array<i64: 1, 32>}, {pipeline_mode = #tpu.pipeline_mode<synchronous>, transform_indices = @transform_9, window_bounds = array<i64: 32, 128>}, {pipeline_mode = #tpu.pipeline_mode<synchronous>, transform_indices = @transform_10, window_bounds = array<i64: 1, 128>}, {pipeline_mode = #tpu.pipeline_mode<synchronous>, transform_indices = @transform_11, window_bounds = array<i64: 128, 32>}, {pipeline_mode = #tpu.pipeline_mode<synchronous>, transform_indices = @transform_12, window_bounds = array<i64: 1, 32>}, {transform_indices = @transform_13, window_bounds = array<i64: 1, 8, 32>}, {transform_indices = @transform_14, window_bounds = array<i64: 1, 4, 8, 8>}]} {
    %c0_i32 = arith.constant 0 : i32
    %0 = arith.cmpi eq, %arg1, %c0_i32 : i32
    %1 = arith.extui %0 : i1 to i32
    %c0_i32_0 = arith.constant 0 : i32
    %2 = arith.cmpi ne, %1, %c0_i32_0 : i32
    scf.if %2 {
      %c0_51 = arith.constant 0 : index
      %c0_52 = arith.constant 0 : index
      %c0_53 = arith.constant 0 : index
      %112 = vector.load %arg2[%c0_51, %c0_52, %c0_53] : memref<1x8x32xf32, #tpu.memory_space<vmem>>, vector<1x8x32xf32>
      %113 = vector.shape_cast %112 : vector<1x8x32xf32> to vector<8x32xf32>
      %c0_54 = arith.constant 0 : index
      %c0_55 = arith.constant 0 : index
      %114 = vector.load %arg4[%c0_54, %c0_55] : memref<1x32xf32, #tpu.memory_space<vmem>>, vector<1x32xf32>
      %115 = vector.shape_cast %114 : vector<1x32xf32> to vector<32xf32>
      %c0_56 = arith.constant 0 : index
      %c0_57 = arith.constant 0 : index
      %116 = vector.load %arg5[%c0_56, %c0_57] : memref<1x32xf32, #tpu.memory_space<vmem>>, vector<1x32xf32>
      %117 = vector.shape_cast %116 : vector<1x32xf32> to vector<32xf32>
      %cst_58 = arith.constant dense<0.000000e+00> : vector<8xf32>
      %118 = vector.multi_reduction <add>, %113, %cst_58 [1] : vector<8x32xf32> to vector<8xf32>
      %119 = vector.shape_cast %118 : vector<8xf32> to vector<8x1xf32>
      %cst_59 = arith.constant 3.200000e+01 : f32
      %120 = vector.broadcast %cst_59 : f32 to vector<8x1xf32>
      %121 = arith.divf %119, %120 : vector<8x1xf32>
      %122 = vector.broadcast %121 : vector<8x1xf32> to vector<8x32xf32>
      %123 = arith.subf %113, %122 : vector<8x32xf32>
      %124 = arith.mulf %123, %123 : vector<8x32xf32>
      %cst_60 = arith.constant dense<0.000000e+00> : vector<8xf32>
      %125 = vector.multi_reduction <add>, %124, %cst_60 [1] : vector<8x32xf32> to vector<8xf32>
      %126 = vector.shape_cast %125 : vector<8xf32> to vector<8x1xf32>
      %cst_61 = arith.constant 3.200000e+01 : f32
      %127 = vector.broadcast %cst_61 : f32 to vector<8x1xf32>
      %128 = arith.divf %126, %127 : vector<8x1xf32>
      %129 = vector.broadcast %121 : vector<8x1xf32> to vector<8x32xf32>
      %130 = arith.subf %113, %129 : vector<8x32xf32>
      %cst_62 = arith.constant 9.99999974E-6 : f32
      %131 = vector.broadcast %cst_62 : f32 to vector<8x1xf32>
      %132 = arith.addf %128, %131 : vector<8x1xf32>
      %133 = math.rsqrt %132 : vector<8x1xf32>
      %134 = vector.broadcast %133 : vector<8x1xf32> to vector<8x32xf32>
      %135 = arith.mulf %130, %134 : vector<8x32xf32>
      %136 = vector.shape_cast %115 : vector<32xf32> to vector<1x32xf32>
      %137 = vector.broadcast %136 : vector<1x32xf32> to vector<8x32xf32>
      %138 = arith.mulf %135, %137 : vector<8x32xf32>
      %139 = vector.shape_cast %117 : vector<32xf32> to vector<1x32xf32>
      %140 = vector.broadcast %139 : vector<1x32xf32> to vector<8x32xf32>
      %141 = arith.addf %138, %140 : vector<8x32xf32>
      %142 = arith.truncf %141 : vector<8x32xf32> to vector<8x32xbf16>
      %c0_63 = arith.constant 0 : index
      %c0_64 = arith.constant 0 : index
      %143 = vector.load %arg6[%c0_63, %c0_64] : memref<32x96xbf16, #tpu.memory_space<vmem>>, vector<32x96xbf16>
      %cst_65 = arith.constant dense<0.000000e+00> : vector<8x96xf32>
      %144 = tpu.matmul %142, %143, %cst_65 {dimension_numbers = #tpu.dot_dimension_numbers<[1], [0], [0], [1], [0, 0, 1, 1], [], []>} : vector<8x32xbf16>, vector<32x96xbf16>, vector<8x96xf32> -> vector<8x96xf32>
      %145 = arith.truncf %144 : vector<8x96xf32> to vector<8x96xbf16>
      %146 = vector.extract_strided_slice %145 {offsets = [0, 32], sizes = [8, 8], strides = [1, 1]} : vector<8x96xbf16> to vector<8x8xbf16>
      %c0_66 = arith.constant 0 : index
      %c0_67 = arith.constant 0 : index
      %c0_68 = arith.constant 0 : index
      %147 = vector.load %arg18[%c0_66, %c0_67, %c0_68] : memref<4x8x8xbf16, #tpu.memory_space<vmem>>, vector<1x8x8xbf16>
      %148 = vector.shape_cast %147 : vector<1x8x8xbf16> to vector<8x8xbf16>
      %149 = vector.shape_cast %146 : vector<8x8xbf16> to vector<1x8x8xbf16>
      tpu.vector_store %arg18[%c0_66, %c0_67, %c0_68], %149 {strides = array<i32>} : memref<4x8x8xbf16, #tpu.memory_space<vmem>>, vector<1x8x8xbf16>,
      %150 = vector.extract_strided_slice %145 {offsets = [0, 64], sizes = [8, 8], strides = [1, 1]} : vector<8x96xbf16> to vector<8x8xbf16>
      %c0_69 = arith.constant 0 : index
      %c0_70 = arith.constant 0 : index
      %c0_71 = arith.constant 0 : index
      %151 = vector.load %arg19[%c0_69, %c0_70, %c0_71] : memref<4x8x8xbf16, #tpu.memory_space<vmem>>, vector<1x8x8xbf16>
      %152 = vector.shape_cast %151 : vector<1x8x8xbf16> to vector<8x8xbf16>
      %153 = vector.shape_cast %150 : vector<8x8xbf16> to vector<1x8x8xbf16>
      tpu.vector_store %arg19[%c0_69, %c0_70, %c0_71], %153 {strides = array<i32>} : memref<4x8x8xbf16, #tpu.memory_space<vmem>>, vector<1x8x8xbf16>,
      %154 = vector.extract_strided_slice %145 {offsets = [0, 0], sizes = [8, 8], strides = [1, 1]} : vector<8x96xbf16> to vector<8x8xbf16>
      %c0_72 = arith.constant 0 : index
      %c0_73 = arith.constant 0 : index
      %c0_74 = arith.constant 0 : index
      %c0_75 = arith.constant 0 : index
      %155 = vector.load %arg17[%c0_72, %c0_73, %c0_74, %c0_75] : memref<1x4x8x8xbf16, #tpu.memory_space<vmem>>, vector<1x1x8x8xbf16>
      %156 = vector.shape_cast %155 : vector<1x1x8x8xbf16> to vector<8x8xbf16>
      %157 = vector.shape_cast %154 : vector<8x8xbf16> to vector<1x1x8x8xbf16>
      tpu.vector_store %arg17[%c0_72, %c0_73, %c0_74, %c0_75], %157 {strides = array<i32>} : memref<1x4x8x8xbf16, #tpu.memory_space<vmem>>, vector<1x1x8x8xbf16>,
      %158 = vector.extract_strided_slice %145 {offsets = [0, 40], sizes = [8, 8], strides = [1, 1]} : vector<8x96xbf16> to vector<8x8xbf16>
      %c1 = arith.constant 1 : index
      %c0_76 = arith.constant 0 : index
      %c0_77 = arith.constant 0 : index
      %159 = vector.load %arg18[%c1, %c0_76, %c0_77] : memref<4x8x8xbf16, #tpu.memory_space<vmem>>, vector<1x8x8xbf16>
      %160 = vector.shape_cast %159 : vector<1x8x8xbf16> to vector<8x8xbf16>
      %161 = vector.shape_cast %158 : vector<8x8xbf16> to vector<1x8x8xbf16>
      tpu.vector_store %arg18[%c1, %c0_76, %c0_77], %161 {strides = array<i32>} : memref<4x8x8xbf16, #tpu.memory_space<vmem>>, vector<1x8x8xbf16>,
      %162 = vector.extract_strided_slice %145 {offsets = [0, 72], sizes = [8, 8], strides = [1, 1]} : vector<8x96xbf16> to vector<8x8xbf16>
      %c1_78 = arith.constant 1 : index
      %c0_79 = arith.constant 0 : index
      %c0_80 = arith.constant 0 : index
      %163 = vector.load %arg19[%c1_78, %c0_79, %c0_80] : memref<4x8x8xbf16, #tpu.memory_space<vmem>>, vector<1x8x8xbf16>
      %164 = vector.shape_cast %163 : vector<1x8x8xbf16> to vector<8x8xbf16>
      %165 = vector.shape_cast %162 : vector<8x8xbf16> to vector<1x8x8xbf16>
      tpu.vector_store %arg19[%c1_78, %c0_79, %c0_80], %165 {strides = array<i32>} : memref<4x8x8xbf16, #tpu.memory_space<vmem>>, vector<1x8x8xbf16>,
      %166 = vector.extract_strided_slice %145 {offsets = [0, 8], sizes = [8, 8], strides = [1, 1]} : vector<8x96xbf16> to vector<8x8xbf16>
      %c0_81 = arith.constant 0 : index
      %c1_82 = arith.constant 1 : index
      %c0_83 = arith.constant 0 : index
      %c0_84 = arith.constant 0 : index
      %167 = vector.load %arg17[%c0_81, %c1_82, %c0_83, %c0_84] : memref<1x4x8x8xbf16, #tpu.memory_space<vmem>>, vector<1x1x8x8xbf16>
      %168 = vector.shape_cast %167 : vector<1x1x8x8xbf16> to vector<8x8xbf16>
      %169 = vector.shape_cast %166 : vector<8x8xbf16> to vector<1x1x8x8xbf16>
      tpu.vector_store %arg17[%c0_81, %c1_82, %c0_83, %c0_84], %169 {strides = array<i32>} : memref<1x4x8x8xbf16, #tpu.memory_space<vmem>>, vector<1x1x8x8xbf16>,
      %170 = vector.extract_strided_slice %145 {offsets = [0, 48], sizes = [8, 8], strides = [1, 1]} : vector<8x96xbf16> to vector<8x8xbf16>
      %c2 = arith.constant 2 : index
      %c0_85 = arith.constant 0 : index
      %c0_86 = arith.constant 0 : index
      %171 = vector.load %arg18[%c2, %c0_85, %c0_86] : memref<4x8x8xbf16, #tpu.memory_space<vmem>>, vector<1x8x8xbf16>
      %172 = vector.shape_cast %171 : vector<1x8x8xbf16> to vector<8x8xbf16>
      %173 = vector.shape_cast %170 : vector<8x8xbf16> to vector<1x8x8xbf16>
      tpu.vector_store %arg18[%c2, %c0_85, %c0_86], %173 {strides = array<i32>} : memref<4x8x8xbf16, #tpu.memory_space<vmem>>, vector<1x8x8xbf16>,
      %174 = vector.extract_strided_slice %145 {offsets = [0, 80], sizes = [8, 8], strides = [1, 1]} : vector<8x96xbf16> to vector<8x8xbf16>
      %c2_87 = arith.constant 2 : index
      %c0_88 = arith.constant 0 : index
      %c0_89 = arith.constant 0 : index
      %175 = vector.load %arg19[%c2_87, %c0_88, %c0_89] : memref<4x8x8xbf16, #tpu.memory_space<vmem>>, vector<1x8x8xbf16>
      %176 = vector.shape_cast %175 : vector<1x8x8xbf16> to vector<8x8xbf16>
      %177 = vector.shape_cast %174 : vector<8x8xbf16> to vector<1x8x8xbf16>
      tpu.vector_store %arg19[%c2_87, %c0_88, %c0_89], %177 {strides = array<i32>} : memref<4x8x8xbf16, #tpu.memory_space<vmem>>, vector<1x8x8xbf16>,
      %178 = vector.extract_strided_slice %145 {offsets = [0, 16], sizes = [8, 8], strides = [1, 1]} : vector<8x96xbf16> to vector<8x8xbf16>
      %c0_90 = arith.constant 0 : index
      %c2_91 = arith.constant 2 : index
      %c0_92 = arith.constant 0 : index
      %c0_93 = arith.constant 0 : index
      %179 = vector.load %arg17[%c0_90, %c2_91, %c0_92, %c0_93] : memref<1x4x8x8xbf16, #tpu.memory_space<vmem>>, vector<1x1x8x8xbf16>
      %180 = vector.shape_cast %179 : vector<1x1x8x8xbf16> to vector<8x8xbf16>
      %181 = vector.shape_cast %178 : vector<8x8xbf16> to vector<1x1x8x8xbf16>
      tpu.vector_store %arg17[%c0_90, %c2_91, %c0_92, %c0_93], %181 {strides = array<i32>} : memref<1x4x8x8xbf16, #tpu.memory_space<vmem>>, vector<1x1x8x8xbf16>,
      %182 = vector.extract_strided_slice %145 {offsets = [0, 56], sizes = [8, 8], strides = [1, 1]} : vector<8x96xbf16> to vector<8x8xbf16>
      %c3 = arith.constant 3 : index
      %c0_94 = arith.constant 0 : index
      %c0_95 = arith.constant 0 : index
      %183 = vector.load %arg18[%c3, %c0_94, %c0_95] : memref<4x8x8xbf16, #tpu.memory_space<vmem>>, vector<1x8x8xbf16>
      %184 = vector.shape_cast %183 : vector<1x8x8xbf16> to vector<8x8xbf16>
      %185 = vector.shape_cast %182 : vector<8x8xbf16> to vector<1x8x8xbf16>
      tpu.vector_store %arg18[%c3, %c0_94, %c0_95], %185 {strides = array<i32>} : memref<4x8x8xbf16, #tpu.memory_space<vmem>>, vector<1x8x8xbf16>,
      %186 = vector.extract_strided_slice %145 {offsets = [0, 88], sizes = [8, 8], strides = [1, 1]} : vector<8x96xbf16> to vector<8x8xbf16>
      %c3_96 = arith.constant 3 : index
      %c0_97 = arith.constant 0 : index
      %c0_98 = arith.constant 0 : index
      %187 = vector.load %arg19[%c3_96, %c0_97, %c0_98] : memref<4x8x8xbf16, #tpu.memory_space<vmem>>, vector<1x8x8xbf16>
      %188 = vector.shape_cast %187 : vector<1x8x8xbf16> to vector<8x8xbf16>
      %189 = vector.shape_cast %186 : vector<8x8xbf16> to vector<1x8x8xbf16>
      tpu.vector_store %arg19[%c3_96, %c0_97, %c0_98], %189 {strides = array<i32>} : memref<4x8x8xbf16, #tpu.memory_space<vmem>>, vector<1x8x8xbf16>,
      %190 = vector.extract_strided_slice %145 {offsets = [0, 24], sizes = [8, 8], strides = [1, 1]} : vector<8x96xbf16> to vector<8x8xbf16>
      %c0_99 = arith.constant 0 : index
      %c3_100 = arith.constant 3 : index
      %c0_101 = arith.constant 0 : index
      %c0_102 = arith.constant 0 : index
      %191 = vector.load %arg17[%c0_99, %c3_100, %c0_101, %c0_102] : memref<1x4x8x8xbf16, #tpu.memory_space<vmem>>, vector<1x1x8x8xbf16>
      %192 = vector.shape_cast %191 : vector<1x1x8x8xbf16> to vector<8x8xbf16>
      %193 = vector.shape_cast %190 : vector<8x8xbf16> to vector<1x1x8x8xbf16>
      tpu.vector_store %arg17[%c0_99, %c3_100, %c0_101, %c0_102], %193 {strides = array<i32>} : memref<1x4x8x8xbf16, #tpu.memory_space<vmem>>, vector<1x1x8x8xbf16>,
    } else {
    }
    %3 = arith.index_cast %arg1 : i32 to index
    %c0 = arith.constant 0 : index
    %c0_1 = arith.constant 0 : index
    %c0_2 = arith.constant 0 : index
    %4 = vector.load %arg17[%3, %c0, %c0_1, %c0_2] : memref<1x4x8x8xbf16, #tpu.memory_space<vmem>>, vector<1x4x8x8xbf16>
    %5 = vector.shape_cast %4 : vector<1x4x8x8xbf16> to vector<4x8x8xbf16>
    %c0_3 = arith.constant 0 : index
    %c0_4 = arith.constant 0 : index
    %c0_5 = arith.constant 0 : index
    %6 = vector.load %arg18[%c0_3, %c0_4, %c0_5] : memref<4x8x8xbf16, #tpu.memory_space<vmem>>, vector<4x8x8xbf16>
    %c0_6 = arith.constant 0 : index
    %c0_7 = arith.constant 0 : index
    %c0_8 = arith.constant 0 : index
    %7 = vector.load %arg19[%c0_6, %c0_7, %c0_8] : memref<4x8x8xbf16, #tpu.memory_space<vmem>>, vector<4x8x8xbf16>
    "tpu.trace_start"() <{level = 10 : i32, message = "hqd,hkd->hqk"}> : () -> ()
    %cst = arith.constant dense<0.000000e+00> : vector<4x8x8xf32>
    %8 = tpu.matmul %5, %6, %cst {dimension_numbers = #tpu.dot_dimension_numbers<[2], [2], [1], [1], [0, 0, 0, 1, 1, 1], [0], [0]>} : vector<4x8x8xbf16>, vector<4x8x8xbf16>, vector<4x8x8xf32> -> vector<4x8x8xf32>
    "tpu.trace_stop"() : () -> ()
    %c8_i32 = arith.constant 8 : i32
    %9 = arith.muli %arg1, %c8_i32 : i32
    %10 = tpu.iota {dimensions = array<i32: 0>} : vector<8x8xi32>
    %11 = vector.broadcast %9 : i32 to vector<8x8xi32>
    %12 = arith.addi %10, %11 : vector<8x8xi32>
    %13 = tpu.iota {dimensions = array<i32: 1>} : vector<8x8xi32>
    %14 = arith.cmpi sge, %12, %13 : vector<8x8xi32>
    %cst_9 = arith.constant 0.000000e+00 : f32
    %cst_10 = arith.constant 0xFF800000 : f32
    %15 = vector.broadcast %cst_9 : f32 to vector<8x8xf32>
    %16 = vector.broadcast %cst_10 : f32 to vector<8x8xf32>
    %17 = arith.select %14, %15, %16 : vector<8x8xi1>, vector<8x8xf32>
    %18 = vector.shape_cast %17 : vector<8x8xf32> to vector<1x8x8xf32>
    %19 = vector.broadcast %18 : vector<1x8x8xf32> to vector<4x8x8xf32>
    %20 = arith.addf %8, %19 : vector<4x8x8xf32>
    %c0_11 = arith.constant 0 : index
    %c0_12 = arith.constant 0 : index
    %c0_13 = arith.constant 0 : index
    %c0_14 = arith.constant 0 : index
    %21 = vector.load %arg16[%c0_11, %c0_12, %c0_13, %c0_14] : memref<1x4x8x8xf32, #tpu.memory_space<vmem>>, vector<1x4x8x8xf32>
    %22 = vector.shape_cast %21 : vector<1x4x8x8xf32> to vector<4x8x8xf32>
    %23 = vector.shape_cast %20 : vector<4x8x8xf32> to vector<1x4x8x8xf32>
    tpu.vector_store %arg16[%c0_11, %c0_12, %c0_13, %c0_14], %23 {strides = array<i32>} : memref<1x4x8x8xf32, #tpu.memory_space<vmem>>, vector<1x4x8x8xf32>,
    %cst_15 = arith.constant dense<0xFF800000> : vector<4x8xf32>
    %24 = vector.multi_reduction <maximumf>, %20, %cst_15 [2] : vector<4x8x8xf32> to vector<4x8xf32>
    %25 = vector.shape_cast %24 : vector<4x8xf32> to vector<4x8x1xf32>
    %26 = vector.broadcast %25 : vector<4x8x1xf32> to vector<4x8x8xf32>
    %27 = arith.subf %20, %26 : vector<4x8x8xf32>
    %28 = math.exp %27 : vector<4x8x8xf32>
    %cst_16 = arith.constant dense<0.000000e+00> : vector<4x8xf32>
    %29 = vector.multi_reduction <add>, %28, %cst_16 [2] : vector<4x8x8xf32> to vector<4x8xf32>
    %30 = vector.shape_cast %29 : vector<4x8xf32> to vector<4x8x1xf32>
    %31 = tpu.reciprocal %30 {approx = true} : vector<4x8x1xf32> -> vector<4x8x1xf32>
    %32 = vector.broadcast %31 : vector<4x8x1xf32> to vector<4x8x8xf32>
    %33 = arith.mulf %28, %32 : vector<4x8x8xf32>
    %34 = arith.truncf %33 : vector<4x8x8xf32> to vector<4x8x8xbf16>
    "tpu.trace_start"() <{level = 10 : i32, message = "hqk,hkd->hqd"}> : () -> ()
    %cst_17 = arith.constant dense<0.000000e+00> : vector<4x8x8xf32>
    %35 = tpu.matmul %34, %7, %cst_17 {dimension_numbers = #tpu.dot_dimension_numbers<[2], [1], [1], [2], [0, 0, 0, 1, 1, 2], [0], [0]>} : vector<4x8x8xbf16>, vector<4x8x8xbf16>, vector<4x8x8xf32> -> vector<4x8x8xf32>
    "tpu.trace_stop"() : () -> ()
    %36 = arith.truncf %35 : vector<4x8x8xf32> to vector<4x8x8xbf16>
    %37 = vector.extract_strided_slice %36 {offsets = [0, 0, 0], sizes = [1, 8, 8], strides = [1, 1, 1]} : vector<4x8x8xbf16> to vector<1x8x8xbf16>
    %38 = vector.shape_cast %37 : vector<1x8x8xbf16> to vector<8x8xbf16>
    %39 = vector.extract_strided_slice %36 {offsets = [1, 0, 0], sizes = [1, 8, 8], strides = [1, 1, 1]} : vector<4x8x8xbf16> to vector<1x8x8xbf16>
    %40 = vector.shape_cast %39 : vector<1x8x8xbf16> to vector<8x8xbf16>
    %41 = vector.extract_strided_slice %36 {offsets = [2, 0, 0], sizes = [1, 8, 8], strides = [1, 1, 1]} : vector<4x8x8xbf16> to vector<1x8x8xbf16>
    %42 = vector.shape_cast %41 : vector<1x8x8xbf16> to vector<8x8xbf16>
    %43 = vector.extract_strided_slice %36 {offsets = [3, 0, 0], sizes = [1, 8, 8], strides = [1, 1, 1]} : vector<4x8x8xbf16> to vector<1x8x8xbf16>
    %44 = vector.shape_cast %43 : vector<1x8x8xbf16> to vector<8x8xbf16>
    %45 = tpu.concatenate %38, %40, %42, %44 in 1 : vector<8x8xbf16>, vector<8x8xbf16>, vector<8x8xbf16>, vector<8x8xbf16> -> vector<8x32xbf16>
    %c0_18 = arith.constant 0 : index
    %c0_19 = arith.constant 0 : index
    %46 = vector.load %arg7[%c0_18, %c0_19] : memref<32x32xbf16, #tpu.memory_space<vmem>>, vector<32x32xbf16>
    %cst_20 = arith.constant dense<0.000000e+00> : vector<8x32xf32>
    %47 = tpu.matmul %45, %46, %cst_20 {dimension_numbers = #tpu.dot_dimension_numbers<[1], [0], [0], [1], [0, 0, 1, 1], [], []>} : vector<8x32xbf16>, vector<32x32xbf16>, vector<8x32xf32> -> vector<8x32xf32>
    %c0_21 = arith.constant 0 : index
    %c0_22 = arith.constant 0 : index
    %48 = vector.load %arg8[%c0_21, %c0_22] : memref<1x32xf32, #tpu.memory_space<vmem>>, vector<1x32xf32>
    %49 = vector.shape_cast %48 : vector<1x32xf32> to vector<32xf32>
    %50 = vector.shape_cast %49 : vector<32xf32> to vector<1x32xf32>
    %51 = vector.broadcast %50 : vector<1x32xf32> to vector<8x32xf32>
    %52 = arith.addf %47, %51 : vector<8x32xf32>
    %c0_23 = arith.constant 0 : index
    %c0_24 = arith.constant 0 : index
    %c0_25 = arith.constant 0 : index
    %53 = vector.load %arg3[%c0_23, %c0_24, %c0_25] : memref<1x8x32xf32, #tpu.memory_space<vmem>>, vector<1x8x32xf32>
    %54 = vector.shape_cast %53 : vector<1x8x32xf32> to vector<8x32xf32>
    %55 = arith.addf %54, %52 : vector<8x32xf32>
    %c0_26 = arith.constant 0 : index
    %c0_27 = arith.constant 0 : index
    %56 = vector.load %arg9[%c0_26, %c0_27] : memref<1x32xf32, #tpu.memory_space<vmem>>, vector<1x32xf32>
    %57 = vector.shape_cast %56 : vector<1x32xf32> to vector<32xf32>
    %c0_28 = arith.constant 0 : index
    %c0_29 = arith.constant 0 : index
    %58 = vector.load %arg10[%c0_28, %c0_29] : memref<1x32xf32, #tpu.memory_space<vmem>>, vector<1x32xf32>
    %59 = vector.shape_cast %58 : vector<1x32xf32> to vector<32xf32>
    %cst_30 = arith.constant dense<0.000000e+00> : vector<8xf32>
    %60 = vector.multi_reduction <add>, %55, %cst_30 [1] : vector<8x32xf32> to vector<8xf32>
    %61 = vector.shape_cast %60 : vector<8xf32> to vector<8x1xf32>
    %cst_31 = arith.constant 3.200000e+01 : f32
    %62 = vector.broadcast %cst_31 : f32 to vector<8x1xf32>
    %63 = arith.divf %61, %62 : vector<8x1xf32>
    %64 = vector.broadcast %63 : vector<8x1xf32> to vector<8x32xf32>
    %65 = arith.subf %55, %64 : vector<8x32xf32>
    %66 = arith.mulf %65, %65 : vector<8x32xf32>
    %cst_32 = arith.constant dense<0.000000e+00> : vector<8xf32>
    %67 = vector.multi_reduction <add>, %66, %cst_32 [1] : vector<8x32xf32> to vector<8xf32>
    %68 = vector.shape_cast %67 : vector<8xf32> to vector<8x1xf32>
    %cst_33 = arith.constant 3.200000e+01 : f32
    %69 = vector.broadcast %cst_33 : f32 to vector<8x1xf32>
    %70 = arith.divf %68, %69 : vector<8x1xf32>
    %71 = vector.broadcast %63 : vector<8x1xf32> to vector<8x32xf32>
    %72 = arith.subf %55, %71 : vector<8x32xf32>
    %cst_34 = arith.constant 9.99999974E-6 : f32
    %73 = vector.broadcast %cst_34 : f32 to vector<8x1xf32>
    %74 = arith.addf %70, %73 : vector<8x1xf32>
    %75 = math.rsqrt %74 : vector<8x1xf32>
    %76 = vector.broadcast %75 : vector<8x1xf32> to vector<8x32xf32>
    %77 = arith.mulf %72, %76 : vector<8x32xf32>
    %78 = vector.shape_cast %57 : vector<32xf32> to vector<1x32xf32>
    %79 = vector.broadcast %78 : vector<1x32xf32> to vector<8x32xf32>
    %80 = arith.mulf %77, %79 : vector<8x32xf32>
    %81 = vector.shape_cast %59 : vector<32xf32> to vector<1x32xf32>
    %82 = vector.broadcast %81 : vector<1x32xf32> to vector<8x32xf32>
    %83 = arith.addf %80, %82 : vector<8x32xf32>
    %84 = arith.truncf %83 : vector<8x32xf32> to vector<8x32xbf16>
    %c0_35 = arith.constant 0 : index
    %c0_36 = arith.constant 0 : index
    %85 = vector.load %arg11[%c0_35, %c0_36] : memref<32x128xbf16, #tpu.memory_space<vmem>>, vector<32x128xbf16>
    %cst_37 = arith.constant dense<0.000000e+00> : vector<8x128xf32>
    %86 = tpu.matmul %84, %85, %cst_37 {dimension_numbers = #tpu.dot_dimension_numbers<[1], [0], [0], [1], [0, 0, 1, 1], [], []>} : vector<8x32xbf16>, vector<32x128xbf16>, vector<8x128xf32> -> vector<8x128xf32>
    %c0_38 = arith.constant 0 : index
    %c0_39 = arith.constant 0 : index
    %87 = vector.load %arg12[%c0_38, %c0_39] : memref<1x128xf32, #tpu.memory_space<vmem>>, vector<1x128xf32>
    %88 = vector.shape_cast %87 : vector<1x128xf32> to vector<128xf32>
    %89 = vector.shape_cast %88 : vector<128xf32> to vector<1x128xf32>
    %90 = vector.broadcast %89 : vector<1x128xf32> to vector<8x128xf32>
    %91 = arith.addf %86, %90 : vector<8x128xf32>
    %cst_40 = arith.constant 5.000000e-01 : f32
    %92 = vector.broadcast %cst_40 : f32 to vector<8x128xf32>
    %93 = arith.mulf %92, %91 : vector<8x128xf32>
    %cst_41 = arith.constant 0.707106769 : f32
    %94 = vector.broadcast %cst_41 : f32 to vector<8x128xf32>
    %95 = arith.mulf %91, %94 : vector<8x128xf32>
    %96 = math.erf %95 : vector<8x128xf32>
    %cst_42 = arith.constant 1.000000e+00 : f32
    %97 = vector.broadcast %cst_42 : f32 to vector<8x128xf32>
    %98 = arith.addf %97, %96 : vector<8x128xf32>
    %99 = arith.mulf %93, %98 : vector<8x128xf32>
    %100 = arith.truncf %99 : vector<8x128xf32> to vector<8x128xbf16>
    %c0_43 = arith.constant 0 : index
    %c0_44 = arith.constant 0 : index
    %101 = vector.load %arg13[%c0_43, %c0_44] : memref<128x32xbf16, #tpu.memory_space<vmem>>, vector<128x32xbf16>
    %cst_45 = arith.constant dense<0.000000e+00> : vector<8x32xf32>
    %102 = tpu.matmul %100, %101, %cst_45 {dimension_numbers = #tpu.dot_dimension_numbers<[1], [0], [0], [1], [0, 0, 1, 1], [], []>} : vector<8x128xbf16>, vector<128x32xbf16>, vector<8x32xf32> -> vector<8x32xf32>
    %c0_46 = arith.constant 0 : index
    %c0_47 = arith.constant 0 : index
    %103 = vector.load %arg14[%c0_46, %c0_47] : memref<1x32xf32, #tpu.memory_space<vmem>>, vector<1x32xf32>
    %104 = vector.shape_cast %103 : vector<1x32xf32> to vector<32xf32>
    %105 = vector.shape_cast %104 : vector<32xf32> to vector<1x32xf32>
    %106 = vector.broadcast %105 : vector<1x32xf32> to vector<8x32xf32>
    %107 = arith.addf %102, %106 : vector<8x32xf32>
    %108 = arith.addf %55, %107 : vector<8x32xf32>
    %c0_48 = arith.constant 0 : index
    %c0_49 = arith.constant 0 : index
    %c0_50 = arith.constant 0 : index
    %109 = vector.load %arg15[%c0_48, %c0_49, %c0_50] : memref<1x8x32xf32, #tpu.memory_space<vmem>>, vector<1x8x32xf32>
    %110 = vector.shape_cast %109 : vector<1x8x32xf32> to vector<8x32xf32>
    %111 = vector.shape_cast %108 : vector<8x32xf32> to vector<1x8x32xf32>
    tpu.vector_store %arg15[%c0_48, %c0_49, %c0_50], %111 {strides = array<i32>} : memref<1x8x32xf32, #tpu.memory_space<vmem>>, vector<1x8x32xf32>,
    return
  }
  func.func @transform_0(%arg0: i32, %arg1: i32) -> (i32, i32, i32) {
    %c0_i32 = arith.constant 0 : i32
    %c0_i32_0 = arith.constant 0 : i32
    %c0_i32_1 = arith.constant 0 : i32
    return %arg0, %c0_i32, %c0_i32_0 : i32, i32, i32
  }
  func.func @transform_1(%arg0: i32, %arg1: i32) -> (i32, i32, i32) {
    %c0_i32 = arith.constant 0 : i32
    %c0_i32_0 = arith.constant 0 : i32
    return %arg0, %arg1, %c0_i32 : i32, i32, i32
  }
  func.func @transform_2(%arg0: i32, %arg1: i32) -> (i32, i32) {
    %c0_i32 = arith.constant 0 : i32
    %c0_i32_0 = arith.constant 0 : i32
    %c0_i32_1 = arith.constant 0 : i32
    return %c0_i32, %c0_i32_0 : i32, i32
  }
  func.func @transform_3(%arg0: i32, %arg1: i32) -> (i32, i32) {
    %c0_i32 = arith.constant 0 : i32
    %c0_i32_0 = arith.constant 0 : i32
    %c0_i32_1 = arith.constant 0 : i32
    return %c0_i32, %c0_i32_0 : i32, i32
  }
  func.func @transform_4(%arg0: i32, %arg1: i32) -> (i32, i32) {
    %c0_i32 = arith.constant 0 : i32
    %c0_i32_0 = arith.constant 0 : i32
    %c0_i32_1 = arith.constant 0 : i32
    return %c0_i32, %c0_i32_0 : i32, i32
  }
  func.func @transform_5(%arg0: i32, %arg1: i32) -> (i32, i32) {
    %c0_i32 = arith.constant 0 : i32
    %c0_i32_0 = arith.constant 0 : i32
    %c0_i32_1 = arith.constant 0 : i32
    return %c0_i32, %c0_i32_0 : i32, i32
  }
  func.func @transform_6(%arg0: i32, %arg1: i32) -> (i32, i32) {
    %c0_i32 = arith.constant 0 : i32
    %c0_i32_0 = arith.constant 0 : i32
    %c0_i32_1 = arith.constant 0 : i32
    return %c0_i32, %c0_i32_0 : i32, i32
  }
  func.func @transform_7(%arg0: i32, %arg1: i32) -> (i32, i32) {
    %c0_i32 = arith.constant 0 : i32
    %c0_i32_0 = arith.constant 0 : i32
    %c0_i32_1 = arith.constant 0 : i32
    return %c0_i32, %c0_i32_0 : i32, i32
  }
  func.func @transform_8(%arg0: i32, %arg1: i32) -> (i32, i32) {
    %c0_i32 = arith.constant 0 : i32
    %c0_i32_0 = arith.constant 0 : i32
    %c0_i32_1 = arith.constant 0 : i32
    return %c0_i32, %c0_i32_0 : i32, i32
  }
  func.func @transform_9(%arg0: i32, %arg1: i32) -> (i32, i32) {
    %c0_i32 = arith.constant 0 : i32
    %c0_i32_0 = arith.constant 0 : i32
    %c0_i32_1 = arith.constant 0 : i32
    return %c0_i32, %c0_i32_0 : i32, i32
  }
  func.func @transform_10(%arg0: i32, %arg1: i32) -> (i32, i32) {
    %c0_i32 = arith.constant 0 : i32
    %c0_i32_0 = arith.constant 0 : i32
    %c0_i32_1 = arith.constant 0 : i32
    return %c0_i32, %c0_i32_0 : i32, i32
  }
  func.func @transform_11(%arg0: i32, %arg1: i32) -> (i32, i32) {
    %c0_i32 = arith.constant 0 : i32
    %c0_i32_0 = arith.constant 0 : i32
    %c0_i32_1 = arith.constant 0 : i32
    return %c0_i32, %c0_i32_0 : i32, i32
  }
  func.func @transform_12(%arg0: i32, %arg1: i32) -> (i32, i32) {
    %c0_i32 = arith.constant 0 : i32
    %c0_i32_0 = arith.constant 0 : i32
    %c0_i32_1 = arith.constant 0 : i32
    return %c0_i32, %c0_i32_0 : i32, i32
  }
  func.func @transform_13(%arg0: i32, %arg1: i32) -> (i32, i32, i32) {
    %c0_i32 = arith.constant 0 : i32
    %c0_i32_0 = arith.constant 0 : i32
    return %arg0, %arg1, %c0_i32 : i32, i32, i32
  }
  func.func @transform_14(%arg0: i32, %arg1: i32) -> (i32, i32, i32, i32) {
    %c0_i32 = arith.constant 0 : i32
    %c0_i32_0 = arith.constant 0 : i32
    %c0_i32_1 = arith.constant 0 : i32
    return %arg0, %c0_i32, %arg1, %c0_i32_0 : i32, i32, i32, i32
  }
}

</mosaic_0001>

<bundles_post_ra>
// kernel: tpu_custom_call.1
= control target key start
LH: loop header
LB: loop body
LE: loop exit
PB: predicated region body
PF: predicated region fallthrough
CT: control target
= control target key end

     0   :  { %s2425_s0 = inlined_call_operand.vmem [shape: f32[2,8,32], index: 0, kind: input, shape index: {}]   ;;  %s2426_s1 = inlined_call_operand.vmem [shape: f32[2,8,32], index: 1, kind: input, shape index: {}]   ;;  %s2427_s2 = inlined_call_operand.vmem [shape: f32[1,32], index: 2, kind: input, shape index: {}]   ;;  %s2428_s3 = inlined_call_operand.vmem [shape: f32[1,32], index: 3, kind: input, shape index: {}]   ;;  %s2429_s4 = inlined_call_operand.vmem [shape: bf16[32,96], index: 4, kind: input, shape index: {}]   ;;  %s2430_s5 = inlined_call_operand.vmem [shape: bf16[32,32], index: 5, kind: input, shape index: {}]   ;;  %s2431_s6 = inlined_call_operand.vmem [shape: f32[1,32], index: 6, kind: input, shape index: {}]   ;;  %s2432_s7 = inlined_call_operand.vmem [shape: f32[1,32], index: 7, kind: input, shape index: {}]   ;;  %s2433_s8 = inlined_call_operand.vmem [shape: f32[1,32], index: 8, kind: input, shape index: {}]   ;;  %s2434_s9 = inlined_call_operand.vmem [shape: bf16[32,128], index: 9, kind: input, shape index: {}]   ;;  %s2435_s10 = inlined_call_operand.vmem [shape: f32[1,128], index: 10, kind: input, shape index: {}]   ;;  %s2436_s11 = inlined_call_operand.vmem [shape: bf16[128,32], index: 11, kind: input, shape index: {}]   ;;  %s2437_s12 = inlined_call_operand.vmem [shape: f32[1,32], index: 12, kind: input, shape index: {}]   ;;  %s2438_s13 = inlined_call_operand.hbm [shape: f32[2,8,32], index: 13, kind: output, shape index: {0}]   ;;  %s2439_s14 = inlined_call_operand.hbm [shape: f32[2,4,8,8], index: 14, kind: output, shape index: {1}]  }
   0x1   :  { %2443 = sst [smem:[#allocation12_spill]] %s2425_s0 }
   0x2   :  { %2444 = sst [smem:[#allocation13_spill]] %s2426_s1 }
   0x3   :  { %2445 = sst [smem:[#allocation14_spill]] %s2427_s2 }
   0x4   :  { %2446 = sst [smem:[#allocation15_spill]] %s2428_s3 }
   0x5   :  { %2447 = sst [smem:[#allocation16_spill]] %s2429_s4 }
   0x6   :  { %2448 = sst [smem:[#allocation17_spill]] %s2430_s5 }
   0x7   :  { %2449 = sst [smem:[#allocation18_spill]] %s2431_s6 }
   0x8   :  { %20 = vsyncpa [#allocation6], 0 }
   0x9   :  { %22 = vsyncpa [#allocation6 + $0x1], 0 }
   0xa   :  { %23 = vsyncpa [#allocation8], 0 }
   0xb   :  { %25 = vsyncpa [#allocation8 + $0x1], 0  ;;  %s2080_s29 = smov 0   ;;  %s2082_s30 = smov 0  }
   0xc   :  { %s2084_s15 = smov 0   ;;  %s2086_s16 = smov 0  }
   0xd   :  { %s2088_s17 = smov 0   ;;  %s2090_s18 = smov 0  }
   0xe LB: > { %s1582_s19 = sadd.s32 4294967295, %s1983_s18   ;;  %s1583_s20 = sadd.s32 4294967294, %s1983_s18   ;;  %s1983_s18 = sphi %s2090_s18, %s31_s18   ;;  %s1979_s17 = sphi %s2088_s17, %s2468_s17   ;;  %s1975_s16 = sphi %s2086_s16, %s2467_s16   ;;  %s1971_s15 = sphi %s2084_s15, %s2466_s15   ;;  %s1967_s30 = sphi %s2082_s30, %s2465_s30   ;;  %s1963_s29 = sphi %s2080_s29, %s2464_s29  }
   0xf   : > { %s43_s21 = sadd.s32 1, %s1979_s17  ;;  %s337_s22 = sadd.s32 1, %s1971_s15 }
  0x10   : > { %p45_p0 = scmp.ge.s32.totalorder %s43_s21, 2  ;;  %p347_p1 = scmp.ne.s32.totalorder %s1971_s15, %s1967_s30 }
  0x11   : > { %p348_p2 = scmp.eq.s32.totalorder %s1582_s19, 1  ;;  %p353_p3 = scmp.ne.s32.totalorder %s1967_s30, %s1963_s29 }
  0x12   : > { %s2470_s21 = smov (%p45_p0, %s43_s21), 0  ;;  %p354_p5 = scmp.eq.s32.totalorder %s1583_s20, 1 }
  0x13   : > { %2450 = sst [smem:[#allocation11_spill]] %s2470_s21  ;;  %p2120_p4 = por %p348_p2, %p347_p1 }
  0x14   : > { %s332_s24 = ssub.s32 %s1979_s17, %s2470_s21  ;;  %p1586_p6 = scmp.ge.s32.totalorder %s1983_s18, 1 }
  0x15   : > { %p335_p7 = scmp.eq.s32.totalorder %s332_s24, 0  ;;  %p2127_p8 = por %p354_p5, %p353_p3 }
  0x16   : > { %p450_p9 = scmp.lt.s32.totalorder %s1983_s18, 3 }
  0x17   : > { %s2133_s26 = scalar_select %p335_p7, %s1971_s15, %s337_s22  }
  0x18   : > { %p451_p10 = pnand %p1586_p6, %p450_p9 }
  0x19   : > { %p507_p11 = scmp.lt.s32.totalorder (!%p451_p10), %s1975_s16, 1  ;;  %vm526_vm0 = vcmask (!%p451_p10), 261120   ;;  %s2453_s0 = sld [smem:[#allocation12_spill]] (!%p451_p10)  ;;  %v1985_v8 = vmov (!%p451_p10), 0.0   ;;  %vm1986_vm1 = vmmov (!%p451_p10), 0   ;;  %vm622_vm2 = vcmask (!%p451_p10), 60416  }
  0x1a   : > { %454 = sbr.rel (%p451_p10) target bundleno = 2577 (0xa11), region = 72  ;;  %s2454_s4 = sld [smem:[#allocation16_spill]] (!%p451_p10)  ;;  %1667 = vmatprep.subr.bf16.mxu0 (!%p451_p10), %v1985_v8  ;;  %1671 = vmatprep.mubr.msk.bf16.mxu0 (!%p451_p10), %vm1986_vm1, %v1985_v8  ;;  %vm698_vm3 = vcmask (!%p451_p10), 64512   ;;  %v690_v44 = vlaneseq (!%p451_p10)  ;;  %v1994_v47 = vmov (!%p451_p10), -inf   ;;  %vm938_vm5 = vcmask (!%p451_p10), 1043456  }
  0x1b   : > { %1687 = vmatprep.subr.bf16.mxu1 (!%p451_p10), %v1985_v8  ;;  %1689 = vmatprep.mubr.msk.bf16.mxu1 (!%p451_p10), %vm1986_vm1, %v1985_v8  ;;  %s2455_s2 = sld [smem:[#allocation14_spill]] (!%p451_p10)  ;;  %s2456_s3 = sld [smem:[#allocation15_spill]] (!%p451_p10)  ;;  %vm1136_vm6 = vcmask (!%p451_p10), 130048   ;;  %vm1139_vm7 = vcmask (!%p451_p10), 195584  }
  0x1c   : > { %s1987_s20 = smov (!%p451_p10), 80   ;;  %s1988_s21 = smov (!%p451_p10), 96   ;;  %v691_v45 = vshrl.u32 (!%p451_p10), %v690_v44, 7  ;;  %v695_v46 = vand.u32 (!%p451_p10), 127, %v690_v44 }
  0x1d   : > { %s1990_s22 = smov (!%p451_p10), 120   ;;  %s1991_s19 = smov (!%p451_p10), 72  }
  0x1e   : > { %vm696_vm4 = vcmp.ge.s32.totalorder (!%p451_p10), %v691_v45, %v695_v46  ;;  %s2457_s5 = sld [smem:[#allocation17_spill]] (!%p451_p10)  ;;  %s2459_s1 = sld [smem:[#allocation13_spill]] (!%p451_p10) }
  0x1f   : > { %v697_v48 = vsel (!%p451_p10), %vm696_vm4, 0.0, %v1994_v47  ;;  %s2460_s6 = sld [smem:[#allocation18_spill]] (!%p451_p10) }
  0x20   : > { %v1837_v7 = vld [vmem:[%s2454_s4] sm:$0xff] (!%p451_p10)   ;;  %v1838_v9 = vld [vmem:[%s2454_s4 + $0x8] sm:$0xff] (!%p451_p10)  }
  0x21   : > { %s2137_s27 = scalar_select %p507_p11, %s1975_s16, 1  ;;  %1668 = vmatpush3.bf16.msra.mxu0 %v1837_v7  ;;  %v1591_v14 = vld [vmem:[%s2455_s2] ss:$0 sm:$0xff] }
  0x22   : > { %1669 = vmatprep.subr.bf16.mxu0 %v1985_v8  ;;  %v1592_v16 = vld [vmem:[%s2456_s3] ss:$0 sm:$0xff] }
  0x23   : > { %s2441_s28 = sshll.u32 %s2137_s27, 3 }
  0x24   : > { %s510_s24 = scalar_lea.vmem %s2453_s0, %s2441_s28  ;;  %s1992_s28 = smov 112  }
  0x25   : > { %v523_v0 = vld [vmem:[%s510_s24] sm:$0xff]  ;;  %1670 = vmatpush3.bf16.msra.mxu0 %v1838_v9  ;;  %s1989_s24 = smov 88   ;;  %s1999_s0 = smov 16  }
  0x26   : > { %v527_v1 = vsel %vm526_vm0, %v523_v0, 0.0  ;;  %1675 = vmatprep.subr.bf16.mxu0 %v1985_v8 }
  0x27   : > { %528 = vadd.xlane.f32.xlu0 %v527_v1 }
  0xb4   : > { %v529_v2 = vpop.xlane.xlu0 %528 }
  0xb5   : > { %v531_v3 = vmul.f32 0.03125, %v529_v2 }
  0xb7   : > { %v532_v4 = vsub.f32 %v523_v0, %v531_v3 }
  0xb9   : > { %v533_v5 = vmul.f32 %v532_v4, %v532_v4 }
  0xbb   : > { %v534_v6 = vsel %vm526_vm0, %v533_v5, 0.0 }
  0xbc   : > { %535 = vadd.xlane.f32.xlu0 %v534_v6 }
 0x149   : > { %v536_v10 = vpop.xlane.xlu0 %535 }
 0x14a   : > { %v537_v11 = vmul.f32 0.03125, %v536_v10 }
 0x14c   : > { %v538_v12 = vadd.f32 1e-05, %v537_v11 }
 0x14e   : > { %1851 = vrsqrt.f32 %v538_v12 }
 0x158   : > { %v1852_v13 = vpop.eup %1851 }
 0x159   : > { %v540_v15 = vmul.f32 %v1852_v13, %v532_v4 }
 0x15b   : > { %v547_v17 = vmul.f32 %v1591_v14, %v540_v15 }
 0x15d   : > { %v554_v18 = vadd.f32 %v1592_v16, %v547_v17 }
 0x15f   : > { %v555_v19 = vpack.c.bf16 %v554_v18, %v554_v18 }
 0x161   : > { %1672 = vmatmul.mubr.msk.bf16.vlgmr.msra.gmra.mrb[0].mxu0 %vm526_vm0, %v555_v19 }
 0x162   : > { %1677 = vmatprep.mubr.msk.bf16.mxu0 %vm1986_vm1, %v1985_v8 }
 0x234   : > { %v609_v20 = vpop.f32.mrb[0].mxu0 }
 0x235   : > { %v2170_v21 = vpack.c.bf16 %v609_v20, %v609_v20  ;;  %v1673_v22 = vpop.f32.mrb[1].mxu0 }
 0x236   : > { %v612_v23 = vpop.f32.mrb[2].mxu0 }
 0x237   : > { %644 = vrot.lane.b32.xlu0 %v2170_v21, %s1987_s20  ;;  %619 = vrot.lane.b32.xlu1 %v2170_v21, %s1988_s21  ;;  %v1674_v24 = vpop.f32.mrb[3].mxu0  ;;  %628 = vst.msk [vmem:[#allocation2] sm:$0xf] %vm622_vm2, %v2170_v21  ;;  %s1993_s20 = smov 104  }
 0x23b   : > { %629 = vrot.lane.b32.xlu1 %v2170_v21, %s1989_s24 }
 0x23e   : > { %v677_v36 = vld [vmem:[#allocation2] sm:$0xf] }
 0x23f   : > { %639 = vrot.lane.b32.xlu1 %v2170_v21, %s1990_s22  ;;  %s1995_s22 = smov 64  }
 0x243   : > { %659 = vrot.lane.b32.xlu1 %v2170_v21, %s1991_s19  ;;  %s1996_s19 = smov 48  }
 0x247   : > { %654 = vrot.lane.b32.xlu1 %v2170_v21, %s1992_s28  ;;  %s2209_s28 = sand.u32 1, %s1967_s30  }
 0x248   : > { %s1588_s21 = sshll.u32 %s2209_s28, 5 }
 0x249   : > { %s2212_s24 = scalar_lea.vmem [#allocation7], %s1588_s21  ;;  %s1998_s21 = smov 56  }
 0x24b   : > { %669 = vrot.lane.b32.xlu1 %v2170_v21, %s1993_s20  ;;  %s1997_s20 = smov 40  }
 0x2a9   : > { %v645_v25 = vpop.permute.xlu0 %644  ;;  %v620_v26 = vpop.permute.xlu1 %619 }
 0x2aa   : > { %648 = vst.msk [vmem:[#allocation3 + $0x8] sm:$0xf] %vm622_vm2, %v645_v25  ;;  %623 = vst.msk [vmem:[#allocation3] sm:$0xf] %vm622_vm2, %v620_v26 }
 0x2ad   : > { %v630_v27 = vpop.permute.xlu1 %629 }
 0x2ae   : > { %633 = vst.msk [vmem:[#allocation3 + $0x4] sm:$0xf] %vm622_vm2, %v630_v27 }
 0x2b1   : > { %v640_v28 = vpop.permute.xlu1 %639  ;;  %v681_v29 = vld [vmem:[#allocation3] sm:$0xf]  ;;  %v683_v30 = vld [vmem:[#allocation3 + $0x8] sm:$0xf] }
 0x2b2   : > { %643 = vst.msk [vmem:[#allocation2 + $0x4] sm:$0xf] %vm622_vm2, %v640_v28  ;;  %v703_v31 = vsel %vm698_vm3, %v681_v29, 0  ;;  %v795_v32 = vsel %vm698_vm3, %v683_v30, 0 }
 0x2b3   : > { %1676 = vmatpush3.bf16.xpose.msra.mxu0 %v703_v31  ;;  %1688 = vmatpush3.bf16.xpose.msra.mxu1 %v795_v32 }
 0x2b4   : > { %1681 = vmatprep.subr.bf16.mxu0 %v1985_v8  ;;  %1699 = vmatprep.subr.bf16.mxu1 %v1985_v8 }
 0x2b5   : > { %v660_v33 = vpop.permute.xlu1 %659  ;;  %v682_v34 = vld [vmem:[#allocation3 + $0x4] sm:$0xf] }
 0x2b6   : > { %663 = vst.msk [vmem:[#allocation3 + $0xc] sm:$0xf] %vm622_vm2, %v660_v33  ;;  %v749_v37 = vsel %vm698_vm3, %v682_v34, 0 }
 0x2b9   : > { %v655_v35 = vpop.permute.xlu1 %654  ;;  %v678_v40 = vld [vmem:[#allocation2 + $0x4] sm:$0xf] }
 0x2ba   : > { %658 = vst.msk [vmem:[#allocation2 + $0x8] sm:$0xf] %vm622_vm2, %v655_v35  ;;  %1678 = vmatmul.mubr.msk.bf16.vlgmr.msra.gmra.mrb[4].mxu0 %vm698_vm3, %v677_v36 }
 0x2bb   : > { %1682 = vmatpush3.bf16.xpose.msra.mxu0 %v749_v37  ;;  %1683 = vmatprep.mubr.msk.bf16.mxu0 %vm1986_vm1, %v1985_v8 }
 0x2bc   : > { %1693 = vmatprep.subr.bf16.mxu0 %v1985_v8 }
 0x2bd   : > { %v670_v38 = vpop.permute.xlu1 %669  ;;  %v684_v39 = vld [vmem:[#allocation3 + $0xc] sm:$0xf] }
 0x2be   : > { %673 = vst.msk [vmem:[#allocation2 + $0xc] sm:$0xf] %vm622_vm2, %v670_v38  ;;  %v841_v42 = vsel %vm698_vm3, %v684_v39, 0 }
 0x2c1   : > { %v679_v41 = vld [vmem:[#allocation2 + $0x8] sm:$0xf] }
 0x2c2   : > { %1684 = vmatmul.mubr.msk.bf16.vlgmr.msra.gmra.mrb[8].mxu0 %vm698_vm3, %v678_v40  ;;  %1690 = vmatmul.mubr.msk.bf16.vlgmr.msra.gmra.mrb[0].mxu1 %vm698_vm3, %v679_v41 }
 0x2c3   : > { %1694 = vmatpush3.bf16.xpose.msra.mxu0 %v841_v42  ;;  %1695 = vmatprep.mubr.msk.bf16.mxu0 %vm1986_vm1, %v1985_v8 }
 0x2c4   : > { %1701 = vmatprep.mubr.msk.bf16.mxu1 %vm1986_vm1, %v1985_v8  ;;  %1705 = vmatprep.subr.bf16.mxu0 %v1985_v8 }
 0x2c5   : > { %v680_v43 = vld [vmem:[#allocation2 + $0xc] sm:$0xf] }
 0x2ca   : > { %1696 = vmatmul.mubr.msk.bf16.vlgmr.msra.gmra.mrb[12].mxu0 %vm698_vm3, %v680_v43 }
 0x2cb   : > { %1707 = vmatprep.mubr.msk.bf16.mxu0 %vm1986_vm1, %v1985_v8 }
 0x38d   : > { %v739_v49 = vpop.f32.mrb[4].mxu0 }
 0x38e   : > { %v740_v50 = vadd.f32 %v739_v49, %v697_v48  ;;  %v1679_v51 = vpop.f32.mrb[5].mxu0 }
 0x38f   : > { %v742_v52 = vpop.f32.mrb[6].mxu0 }
 0x390   : > { %883 = vst.msk [vmem:[%s2212_s24] sm:$0xff] %vm698_vm3, %v740_v50  ;;  %v1680_v53 = vpop.f32.mrb[7].mxu0  ;;  %v887_v54 = vsel %vm698_vm3, %v740_v50, -inf }
 0x391   : > { %888 = vmax.xlane.f32.xlu1 %v887_v54 }
 0x395   : > { %v785_v55 = vpop.f32.mrb[8].mxu0  ;;  %v831_v56 = vpop.f32.mrb[0].mxu1 }
 0x396   : > { %v786_v57 = vadd.f32 %v785_v55, %v697_v48  ;;  %v832_v58 = vadd.f32 %v831_v56, %v697_v48  ;;  %v1685_v59 = vpop.f32.mrb[9].mxu0  ;;  %v1691_v60 = vpop.f32.mrb[1].mxu1 }
 0x397   : > { %v788_v61 = vpop.f32.mrb[10].mxu0  ;;  %v834_v62 = vpop.f32.mrb[2].mxu1 }
 0x398   : > { %884 = vst.msk [vmem:[%s2212_s24 + $0x8] sm:$0xff] %vm698_vm3, %v786_v57  ;;  %885 = vst.msk [vmem:[%s2212_s24 + $0x10] sm:$0xff] %vm698_vm3, %v832_v58  ;;  %v1686_v63 = vpop.f32.mrb[11].mxu0  ;;  %v1692_v0 = vpop.f32.mrb[3].mxu1  ;;  %v893_v1 = vsel %vm698_vm3, %v832_v58, -inf  ;;  %v890_v2 = vsel %vm698_vm3, %v786_v57, -inf }
 0x399   : > { %894 = vmax.xlane.f32.xlu1 %v893_v1  ;;  %891 = vmax.xlane.f32.xlu0 %v890_v2  ;;  %v1839_v62 = vld [vmem:[%s2457_s5] sm:$0xff]   ;;  %v1840_v0 = vld [vmem:[%s2457_s5 + $0x8] sm:$0xff]  }
 0x39d   : > { %v877_v3 = vpop.f32.mrb[12].mxu0 }
 0x39e   : > { %v878_v4 = vadd.f32 %v877_v3, %v697_v48  ;;  %v1697_v5 = vpop.f32.mrb[13].mxu0 }
 0x39f   : > { %v880_v6 = vpop.f32.mrb[14].mxu0 }
 0x3a0   : > { %886 = vst.msk [vmem:[%s2212_s24 + $0x18] sm:$0xff] %vm698_vm3, %v878_v4  ;;  %v1698_v7 = vpop.f32.mrb[15].mxu0  ;;  %v896_v9 = vsel %vm698_vm3, %v878_v4, -inf }
 0x3a1   : > { %897 = vmax.xlane.f32.xlu0 %v896_v9 }
 0x3aa   : > { %624 = vrot.lane.b32.xlu1 %v2170_v21, %s1995_s22  ;;  %s2442_s22 = smov 8  }
 0x41e   : > { %v889_v10 = vpop.xlane.xlu1 %888 }
 0x41f   : > { %v899_v11 = vsub.f32 %v740_v50, %v889_v10 }
 0x421   : > { %v903_v12 = vmul.f32 1.442695, %v899_v11 }
 0x423   : > { %1853 = vpow2.f32 %v903_v12 }
 0x426   : > { %v895_v13 = vpop.xlane.xlu1 %894  ;;  %v892_v14 = vpop.xlane.xlu0 %891 }
 0x427   : > { %v901_v15 = vsub.f32 %v832_v58, %v895_v13  ;;  %v900_v16 = vsub.f32 %v786_v57, %v892_v14 }
 0x429   : > { %v907_v17 = vmul.f32 1.442695, %v901_v15  ;;  %v905_v18 = vmul.f32 1.442695, %v900_v16 }
 0x42a   : > { %v625_v19 = vpop.permute.xlu1 %624 }
 0x42b   : > { %1855 = vpow2.f32 %v907_v17  ;;  %627 = vst.msk [vmem:[#allocation4] sm:$0xf] %vm622_vm2, %v625_v19 }
 0x42c   : > { %1857 = vpow2.f32 %v905_v18 }
 0x42d   : > { %v1854_v20 = vpop.eup %1853 }
 0x42e   : > { %v898_v22 = vpop.xlane.xlu0 %897  ;;  %v911_v23 = vsel %vm698_vm3, %v1854_v20, 0.0 }
 0x42f   : > { %v902_v24 = vsub.f32 %v878_v4, %v898_v22  ;;  %912 = vadd.xlane.f32.xlu1 %v911_v23 }
 0x431   : > { %v909_v25 = vmul.f32 1.442695, %v902_v24  ;;  %v1605_v24 = vld [vmem:[%s2460_s6] ss:$0 sm:$0xff] }
 0x432   : > { %v685_v26 = vld [vmem:[#allocation4] sm:$0xf] }
 0x433   : > { %1859 = vpow2.f32 %v909_v25  ;;  %v940_v27 = vsel %vm938_vm5, %v685_v26, 0 }
 0x434   : > { %1700 = vmatpush3.bf16.msra.mxu1 %v940_v27 }
 0x435   : > { %v1856_v28 = vpop.eup %1855  ;;  %1711 = vmatprep.subr.bf16.mxu1 %v1985_v8 }
 0x436   : > { %v1858_v29 = vpop.eup %1857  ;;  %v917_v30 = vsel %vm698_vm3, %v1856_v28, 0.0 }
 0x437   : > { %918 = vadd.xlane.f32.xlu1 %v917_v30  ;;  %v914_v31 = vsel %vm698_vm3, %v1858_v29, 0.0 }
 0x438   : > { %915 = vadd.xlane.f32.xlu0 %v914_v31 }
 0x43d   : > { %v1860_v32 = vpop.eup %1859 }
 0x43e   : > { %v920_v33 = vsel %vm698_vm3, %v1860_v32, 0.0 }
 0x43f   : > { %921 = vadd.xlane.f32.xlu0 %v920_v33 }
 0x448   : > { %649 = vrot.lane.b32.xlu1 %v2170_v21, %s1996_s19  ;;  %s2001_s19 = smov 24  }
 0x44c   : > { %664 = vrot.lane.b32.xlu1 %v2170_v21, %s1997_s20 }
 0x455   : > { %634 = vrot.lane.b32.xlu0 %v2170_v21, %s1998_s21 }
 0x4bc   : > { %v913_v34 = vpop.xlane.xlu1 %912 }
 0x4bd   : > { %1861 = vrcp.f32 %v913_v34 }
 0x4c4   : > { %v919_v35 = vpop.xlane.xlu1 %918 }
 0x4c5   : > { %1863 = vrcp.f32 %v919_v35  ;;  %v916_v37 = vpop.xlane.xlu0 %915 }
 0x4c6   : > { %1865 = vrcp.f32 %v916_v37 }
 0x4c7   : > { %v1862_v36 = vpop.eup %1861 }
 0x4c8   : > { %v927_v38 = vmul.f32 %v1862_v36, %v1854_v20  ;;  %v650_v39 = vpop.permute.xlu1 %649 }
 0x4c9   : > { %653 = vst.msk [vmem:[#allocation4 + $0x8] sm:$0xf] %vm622_vm2, %v650_v39  ;;  %v1842_v39 = vld [vmem:[%s2434_s9 + $0x8] sm:$0xff]  }
 0x4ca   : > { %v931_v40 = vpack.c.bf16 %v927_v38, %v927_v38  ;;  %v1841_v38 = vld [vmem:[%s2434_s9] sm:$0xff]  }
 0x4cc   : > { %1702 = vmatmul.mubr.msk.bf16.vlgmr.msra.gmra.mrb[4].mxu1 %vm698_vm3, %v931_v40  ;;  %v665_v41 = vpop.permute.xlu1 %664  ;;  %v922_v42 = vpop.xlane.xlu0 %921  ;;  %v1843_v40 = vld [vmem:[%s2436_s11] sm:$0xff]  }
 0x4cd   : > { %668 = vst.msk [vmem:[#allocation4 + $0xc] sm:$0xf] %vm622_vm2, %v665_v41  ;;  %1713 = vmatprep.mubr.msk.bf16.mxu1 %vm1986_vm1, %v1985_v8  ;;  %1867 = vrcp.f32 %v922_v42  ;;  %v1844_v41 = vld [vmem:[%s2436_s11 + $0x8] sm:$0xff]   ;;  %v1845_v42 = vld [vmem:[%s2436_s11 + $0x10] sm:$0xff]  }
 0x4cf   : > { %v1864_v21 = vpop.eup %1863 }
 0x4d0   : > { %v929_v43 = vmul.f32 %v1864_v21, %v1856_v28  ;;  %v635_v44 = vpop.permute.xlu0 %634  ;;  %v687_v45 = vld [vmem:[#allocation4 + $0x8] sm:$0xf]  ;;  %v1866_v48 = vpop.eup %1865 }
 0x4d1   : > { %638 = vst.msk [vmem:[#allocation4 + $0x4] sm:$0xf] %vm622_vm2, %v635_v44  ;;  %v1032_v46 = vsel %vm938_vm5, %v687_v45, 0  ;;  %v928_v49 = vmul.f32 %v1866_v48, %v1858_v29  ;;  %v1610_v48 = vld [vmem:[%s2433_s8] ss:$0 sm:$0xff] }
 0x4d2   : > { %1712 = vmatpush3.bf16.msra.mxu1 %v1032_v46  ;;  %v933_v47 = vpack.c.bf16 %v929_v43, %v929_v43  ;;  %v1609_v46 = vld [vmem:[%s2432_s7] ss:$0 sm:$0xff] }
 0x4d3   : > { %1723 = vmatprep.subr.bf16.mxu1 %v1985_v8  ;;  %v932_v53 = vpack.c.bf16 %v928_v49, %v928_v49 }
 0x4d4   : > { %v688_v52 = vld [vmem:[#allocation4 + $0xc] sm:$0xf] }
 0x4d5   : > { %1714 = vmatmul.mubr.msk.bf16.vlgmr.msra.gmra.mrb[8].mxu1 %vm698_vm3, %v933_v47  ;;  %v1078_v55 = vsel %vm938_vm5, %v688_v52, 0  ;;  %v1846_v52 = vld [vmem:[%s2436_s11 + $0x18] sm:$0xff]  }
 0x4d6   : > { %1727 = vmatprep.mubr.msk.bf16.mxu1 %vm1986_vm1, %v1985_v8  ;;  %1724 = vmatpush3.bf16.msra.mxu1 %v1839_v62 }
 0x4d7   : > { %v1868_v54 = vpop.eup %1867  ;;  %1725 = vmatprep.subr.bf16.mxu1 %v1985_v8 }
 0x4d8   : > { %v686_v50 = vld [vmem:[#allocation4 + $0x4] sm:$0xf]  ;;  %v930_v56 = vmul.f32 %v1868_v54, %v1860_v32  ;;  %v1848_v54 = vld [vmem:[%s2436_s11 + $0x28] sm:$0xff]  }
 0x4d9   : > { %v986_v51 = vsel %vm938_vm5, %v686_v50, 0 }
 0x4da   : > { %1706 = vmatpush3.bf16.msra.mxu0 %v986_v51  ;;  %v934_v57 = vpack.c.bf16 %v930_v56, %v930_v56  ;;  %1726 = vmatpush3.bf16.msra.mxu1 %v1840_v0  ;;  %v1850_v56 = vld [vmem:[%s2436_s11 + $0x38] sm:$0xff]  }
 0x4db   : > { %1717 = vmatprep.subr.bf16.mxu0 %v1985_v8  ;;  %1739 = vmatprep.subr.bf16.mxu1 %v1985_v8 }
 0x4dd   : > { %1708 = vmatmul.mubr.msk.bf16.vlgmr.msra.gmra.mrb[16].mxu0 %vm698_vm3, %v932_v53  ;;  %v1847_v53 = vld [vmem:[%s2436_s11 + $0x20] sm:$0xff]  }
 0x4de   : > { %1718 = vmatpush3.bf16.msra.mxu0 %v1078_v55  ;;  %1719 = vmatprep.mubr.msk.bf16.mxu0 %vm1986_vm1, %v1985_v8  ;;  %v1849_v55 = vld [vmem:[%s2436_s11 + $0x30] sm:$0xff]  }
 0x4df   : > { %1731 = vmatprep.subr.bf16.mxu0 %v1985_v8 }
 0x4e5   : > { %1720 = vmatmul.mubr.msk.bf16.vlgmr.msra.gmra.mrb[20].mxu0 %vm698_vm3, %v934_v57  ;;  %v1611_v57 = vld [vmem:[%s2435_s10] ss:$0 sm:$0xff] }
 0x4e6   : > { %1735 = vmatprep.mubr.msk.bf16.mxu0 %vm1986_vm1, %v1985_v8  ;;  %1732 = vmatpush3.bf16.msra.mxu0 %v1841_v38 }
 0x4e7   : > { %1733 = vmatprep.subr.bf16.mxu0 %v1985_v8 }
 0x4ea   : > { %1734 = vmatpush3.bf16.msra.mxu0 %v1842_v39 }
 0x59f   : > { %v976_v58 = vpop.f32.mrb[4].mxu1 }
 0x5a0   : > { %v1703_v59 = vpop.f32.mrb[5].mxu1  ;;  %v1120_v17 = vpack.c.bf16 %v976_v58, %v976_v58 }
 0x5a1   : > { %v979_v60 = vpop.f32.mrb[6].mxu1 }
 0x5a2   : > { %v1704_v61 = vpop.f32.mrb[7].mxu1 }
 0x5a8   : > { %v1068_v63 = vpop.f32.mrb[8].mxu1 }
 0x5a9   : > { %v1122_v1 = vpack.c.bf16 %v1068_v63, %v1068_v63  ;;  %v1715_v2 = vpop.f32.mrb[9].mxu1 }
 0x5aa   : > { %v1071_v3 = vpop.f32.mrb[10].mxu1 }
 0x5ab   : > { %1128 = vrot.lane.b32.xlu1 %v1122_v1, %s1999_s0  ;;  %v1716_v4 = vpop.f32.mrb[11].mxu1  ;;  %s2458_s0 = sshll.u32 %s2137_s27, 3  ;;  %s2002_s27 = smov [#allocation7]  }
 0x5ac   : > { %s1877_s3 = sshll.u32 %s2002_s27, 4  ;;  %s1878_s3 = int_to_ptr.vmem [resolvable:$false] %s1877_s3 }
 0x5b0   : > { %v1022_v5 = vpop.f32.mrb[16].mxu0 }
 0x5b1   : > { %v1121_v6 = vpack.c.bf16 %v1022_v5, %v1022_v5  ;;  %v1709_v7 = vpop.f32.mrb[17].mxu0 }
 0x5b2   : > { %v1025_v9 = vpop.f32.mrb[18].mxu0 }
 0x5b3   : > { %1125 = vrot.lane.b32.xlu0 %v1121_v6, %s2442_s22  ;;  %v1710_v10 = vpop.f32.mrb[19].mxu0  ;;  %s1460_s22 = sshll.u32 %s2212_s24, 4  ;;  %s1879_s24 = scalar_lea.vmem %s1878_s3, 1024  ;;  %s2334_s22 = int_to_ptr.vmem [resolvable:$true] %s1460_s22 }
 0x5b4   : > { %s1873_s2 = scalar_lea.vmem %s2334_s22, 512  ;;  %p1880_p1 = scmp.lt.s32.totalorder %s2334_s22, %s1878_s3 }
 0x5b5   : > { %p1874_p12 = scmp.ne.s32.totalorder %s2334_s22, %s1873_s2  ;;  %p1881_p2 = scmp.lt.s32.totalorder %s1879_s24, %s1873_s2 }
 0x5b7   : > { %p1875_p13 = pnand %p1874_p12, %p2120_p4  ;;  %p1882_p3 = por %p1881_p2, %p1880_p1 }
 0x5b8   : > { %v1114_v11 = vpop.f32.mrb[20].mxu0 }
 0x5b9   : > { %v1123_v12 = vpack.c.bf16 %v1114_v11, %v1114_v11  ;;  %v1721_v13 = vpop.f32.mrb[21].mxu0  ;;  %p1876_p0 = pneg %p1875_p13 }
 0x5ba   : > { %v1117_v14 = vpop.f32.mrb[22].mxu0 }
 0x5bb   : > { %1131 = vrot.lane.b32.xlu0 %v1123_v12, %s2001_s19  ;;  %v1722_v15 = vpop.f32.mrb[23].mxu0  ;;  %s517_s19 = scalar_lea.vmem %s2459_s1, %s2458_s0  ;;  %s1632_s1 = sshll.u32 %s1975_s16, 9 }
 0x5bc   : > { %v1208_v25 = vld [vmem:[%s517_s19] sm:$0xff]  ;;  %s2340_s21 = scalar_lea.hbm %s2439_s14, %s1632_s1  ;;  %p1883_p5 = pnand %p1882_p3, %p1876_p0 }
 0x61d   : > { %v1129_v19 = vpop.permute.xlu1 %1128 }
 0x625   : > { %v1126_v16 = vpop.permute.xlu0 %1125 }
 0x626   : > { %v1135_v18 = vsel %vm698_vm3, %v1120_v17, %v1126_v16 }
 0x627   : > { %v1138_v20 = vsel %vm1136_vm6, %v1135_v18, %v1129_v19 }
 0x62d   : > { %v1132_v22 = vpop.permute.xlu0 %1131 }
 0x62e   : > { %v1141_v23 = vsel %vm1139_vm7, %v1138_v20, %v1132_v22 }
 0x62f   : > { %1728 = vmatmul.mubr.msk.bf16.vlgmr.msra.gmra.mrb[12].mxu1 %vm526_vm0, %v1141_v23 }
 0x630   : > { %1755 = vmatprep.mubr.msk.bf16.mxu1 %vm1986_vm1, %v1985_v8  ;;  %1740 = vmatpush3.bf16.msra.mxu1 %v1843_v40 }
 0x631   : > { %1741 = vmatprep.subr.bf16.mxu1 %v1985_v8 }
 0x634   : > { %1742 = vmatpush3.bf16.msra.mxu1 %v1844_v41 }
 0x635   : > { %1743 = vmatprep.subr.bf16.mxu1 %v1985_v8 }
 0x638   : > { %1744 = vmatpush3.bf16.msra.mxu1 %v1845_v42 }
 0x639   : > { %1745 = vmatprep.subr.bf16.mxu1 %v1985_v8 }
 0x63c   : > { %1746 = vmatpush3.bf16.msra.mxu1 %v1846_v52 }
 0x63d   : > { %1747 = vmatprep.subr.bf16.mxu1 %v1985_v8 }
 0x640   : > { %1748 = vmatpush3.bf16.msra.mxu1 %v1847_v53 }
 0x641   : > { %1749 = vmatprep.subr.bf16.mxu1 %v1985_v8 }
 0x644   : > { %1750 = vmatpush3.bf16.msra.mxu1 %v1848_v54 }
 0x645   : > { %1751 = vmatprep.subr.bf16.mxu1 %v1985_v8 }
 0x648   : > { %1752 = vmatpush3.bf16.msra.mxu1 %v1849_v55 }
 0x649   : > { %1753 = vmatprep.subr.bf16.mxu1 %v1985_v8 }
 0x64c   : > { %1754 = vmatpush3.bf16.msra.mxu1 %v1850_v56 }
 0x702   : > { %v1202_v26 = vpop.f32.mrb[12].mxu1 }
 0x703   : > { %v1203_v27 = vadd.f32 %v1605_v24, %v1202_v26  ;;  %v1729_v28 = vpop.f32.mrb[13].mxu1 }
 0x704   : > { %v1205_v29 = vpop.f32.mrb[14].mxu1 }
 0x705   : > { %v2279_v30 = vadd.f32 %v1208_v25, %v1203_v27  ;;  %v1730_v31 = vpop.f32.mrb[15].mxu1 }
 0x707   : > { %v1212_v32 = vsel %vm526_vm0, %v2279_v30, 0.0 }
 0x708   : > { %1213 = vadd.xlane.f32.xlu1 %v1212_v32 }
 0x795   : > { %v1214_v33 = vpop.xlane.xlu1 %1213 }
 0x796   : > { %v1216_v34 = vmul.f32 0.03125, %v1214_v33 }
 0x798   : > { %v1217_v35 = vsub.f32 %v2279_v30, %v1216_v34 }
 0x79a   : > { %v1218_v36 = vmul.f32 %v1217_v35, %v1217_v35 }
 0x79c   : > { %v1219_v37 = vsel %vm526_vm0, %v1218_v36, 0.0 }
 0x79d   : > { %1220 = vadd.xlane.f32.xlu0 %v1219_v37 }
 0x82a   : > { %v1221_v21 = vpop.xlane.xlu0 %1220 }
 0x82b   : > { %v1222_v43 = vmul.f32 0.03125, %v1221_v21 }
 0x82d   : > { %v1223_v44 = vadd.f32 1e-05, %v1222_v43 }
 0x82f   : > { %1869 = vrsqrt.f32 %v1223_v44 }
 0x839   : > { %v1870_v45 = vpop.eup %1869 }
 0x83a   : > { %v1225_v47 = vmul.f32 %v1870_v45, %v1217_v35 }
 0x83c   : > { %v1232_v49 = vmul.f32 %v1609_v46, %v1225_v47 }
 0x83e   : > { %v1239_v50 = vadd.f32 %v1610_v48, %v1232_v49 }
 0x840   : > { %v1240_v51 = vpack.c.bf16 %v1239_v50, %v1239_v50 }
 0x842   : > { %1736 = vmatmul.mubr.msk.bf16.vlgmr.msra.gmra.mrb[24].mxu0 %vm526_vm0, %v1240_v51 }
 0x915   : > { %v1301_v58 = vpop.f32.mrb[24].mxu0 }
 0x916   : > { %v1302_v59 = vadd.f32 %v1611_v57, %v1301_v58  ;;  %v1737_v60 = vpop.f32.mrb[25].mxu0 }
 0x917   : > { %v1304_v61 = vpop.f32.mrb[26].mxu0 }
 0x918   : > { %v1308_v62 = vmul.f32 0.70710677, %v1302_v59  ;;  %v1738_v63 = vpop.f32.mrb[27].mxu0  ;;  %v1307_v0 = vmul.f32 0.5, %v1302_v59 }
 0x91a   : > { %1871 = verf.f32 %v1308_v62 }
 0x924   : > { %v1872_v8 = vpop.eup %1871 }
 0x925   : > { %v1310_v1 = vadd.f32 1.0, %v1872_v8 }
 0x927   : > { %v1311_v2 = vmul.f32 %v1310_v1, %v1307_v0 }
 0x929   : > { %v1312_v3 = vpack.c.bf16 %v1311_v2, %v1311_v2 }
 0x92b   : > { %1756 = vmatmul.mubr.bf16.vlgmr.msra.gmra.mrb[16].mxu1 %v1312_v3 }
 0x92c   : > { %1886 = shalt.err (!%p1883_p5)
}
 0x92d   : > { %s1887_s1 = scalar_lea.hbm %s2340_s21, 512  ;;  %s1891_s27 = scalar_lea.hbm %s2439_s14, 1024 }
 0x92e   : > { %p1888_p6 = scmp.ne.s32.totalorder %s2340_s21, %s1887_s1  ;;  %p1892_p10 = scmp.lt.u32.totalorder %s2340_s21, %s2439_s14 }
 0x92f   : > { %p1893_p11 = scmp.lt.u32.totalorder %s1891_s27, %s1887_s1  ;;  %p1895_p13 = scmp.lt.u32.totalorder %s1887_s1, %s2340_s21 }
 0x930   : > { %p1889_p7 = pnand %p1888_p6, %p2120_p4 }
 0x931   : > { %p1894_p12 = por %p1893_p11, %p1892_p10 }
 0x932   : > { %p1890_p9 = pneg %p1889_p7 }
 0x933   : > { %p1896_p0 = por %p1895_p13, %p1894_p12 }
 0x935   : > { %p1897_p1 = pnand %p1896_p0, %p1890_p9 }
 0x937   : > { %1900 = shalt.err (!%p1897_p1)
}
 0x938   : > { %s2003_s2 = smov 128   ;;  %s2461_s24 = smov 8   ;;  %v1615_v4 = vld [vmem:[%s2437_s12] ss:$0 sm:$0xff] }
 0x939   : > { %s2462_s4 = scalar_lea.sflag [#allocation8], %s2209_s28  ;;  %s1587_s19 = sshll.u32 %s2209_s28, 3 }
 0x93a   : > { %1760 = dma.vmem_to_hbm [thread:$0]  (%p2120_p4), %s2334_s22, 512, %s2340_s21, %s2462_s4, %s2003_s2, %s2003_s2, %s2461_s24  }
 0x93b   : > { %s1626_s1 = sshll.u32 %s1975_s16, 7  ;;  %s499_s27 = scalar_lea.vmem [#allocation5], %s1587_s19 }
 0x93c   : > { %s1446_s3 = sshll.u32 %s499_s27, 4  ;;  %s2376_s4 = scalar_lea.hbm %s2438_s13, %s1626_s1  ;;  %s2378_s3 = int_to_ptr.vmem [resolvable:$true] %s1446_s3 }
 0x93d   : > { %s1427_s16 = scalar_lea.sflag [#allocation6], %s2209_s28  ;;  %s1901_s22 = scalar_lea.vmem %s2378_s3, 128 }
 0x93e   : > { %p1902_p2 = scmp.ne.s32.totalorder %s2378_s3, %s1901_s22  ;;  %s2004_s21 = smov [#allocation5]  }
 0x93f   : > { %s1905_s2 = sshll.u32 %s2004_s21, 4  ;;  %s1906_s2 = int_to_ptr.vmem [resolvable:$false] %s1905_s2 }
 0x940   : > { %p1903_p3 = pnand %p1902_p2, %p2120_p4  ;;  %s1907_s24 = scalar_lea.vmem %s1906_s2, 256 }
 0x941   : > { %p1908_p6 = scmp.lt.s32.totalorder %s2378_s3, %s1906_s2  ;;  %p1909_p7 = scmp.lt.s32.totalorder %s1907_s24, %s1901_s22 }
 0x942   : > { %p1904_p5 = pneg %p1903_p3 }
 0x943   : > { %p1910_p9 = por %p1909_p7, %p1908_p6 }
 0x945   : > { %p1911_p10 = pnand %p1910_p9, %p1904_p5 }
 0x9fe   : > { %v1418_v5 = vpop.f32.mrb[16].mxu1 }
 0x9ff   : > { %v1419_v6 = vadd.f32 %v1615_v4, %v1418_v5  ;;  %v1757_v7 = vpop.f32.mrb[17].mxu1 }
 0xa00   : > { %v1421_v9 = vpop.f32.mrb[18].mxu1 }
 0xa01   : > { %v1424_v10 = vadd.f32 %v1419_v6, %v2279_v30  ;;  %v1758_v11 = vpop.f32.mrb[19].mxu1 }
 0xa03   : > { %1425 = vst.msk [vmem:[%s499_s27] sm:$0xff] %vm526_vm0, %v1424_v10 }
 0xa04   : > { %1914 = shalt.err (!%p1911_p10)
}
 0xa05   : > { %s1915_s5 = scalar_lea.hbm %s2376_s4, 128  ;;  %s1919_s19 = scalar_lea.hbm %s2438_s13, 256 }
 0xa06   : > { %p1916_p11 = scmp.ne.s32.totalorder %s2376_s4, %s1915_s5  ;;  %p1920_p0 = scmp.lt.u32.totalorder %s2376_s4, %s2438_s13 }
 0xa07   : > { %p1921_p1 = scmp.lt.u32.totalorder %s1919_s19, %s1915_s5  ;;  %p1923_p3 = scmp.lt.u32.totalorder %s1915_s5, %s2376_s4 }
 0xa08   : > { %p1917_p12 = pnand %p1916_p11, %p2120_p4 }
 0xa09   : > { %p1922_p2 = por %p1921_p1, %p1920_p0 }
 0xa0a   : > { %p1918_p13 = pneg %p1917_p12 }
 0xa0b   : > { %p1924_p5 = por %p1923_p3, %p1922_p2 }
 0xa0d   : > { %p1925_p6 = pnand %p1924_p5, %p1918_p13 }
 0xa0f   : > { %1928 = shalt.err (!%p1925_p6)
}
 0xa10   : > { %1759 = dma.vmem_to_hbm [thread:$0]  (%p2120_p4), %s2378_s3, 128, %s2376_s4, %s1427_s16  }
 0xa11 PF: > { %p1770_p7 = scmp.ge.s32.totalorder %s1983_s18, 2  ;;  %s1475_s1 = sand.u32 1, %s1963_s29  }
 0xa12   : > { %s1476_s27 = scalar_lea.sflag [#allocation6], %s1475_s1 }
 0xa13   : > { %p1764_p9 = pnand %p1770_p7, %p2127_p8 }
 0xa15   : > { %1954 = dma.done.wait (!%p1764_p9), %s1476_s27, 128  }
 0xa16   : > { %1956 = vsyncadd (!%p1764_p9), %s1476_s27, 4294967168  ;;  %s1485_s22 = scalar_lea.sflag [#allocation8], %s1475_s1 }
 0xa17   : > { %1958 = dma.done.wait (!%p1764_p9), %s1485_s22, 512  }
 0xa18   : > { %1960 = vsyncadd (!%p1764_p9), %s1485_s22, 4294966784  ;;  %s31_s18 = sadd.s32 1, %s1983_s18   ;;  %s2463_s23 = sld [smem:[#allocation11_spill]] }
 0xa19   : > { %p28_p10 = scmp.ge.s32.totalorder %s31_s18, 4   ;;  %s2464_s29 = smov %s1967_s30 }
 0xa1a   : > { %s2465_s30 = smov %s1971_s15  ;;  %s2466_s15 = smov %s2133_s26 }
 0xa1b   : > { %s2467_s16 = smov %s1979_s17  ;;  %30 = sbr.rel (!%p28_p10) target bundleno = 14 (0xe), region = 141 }
 0xa1e   : > { %s2468_s17 = smov %s2463_s23 }
 0xa22   :  { %1490 = vsyncpa [#allocation6], 1 }
 0xa23   :  { %1492 = vsyncpa [#allocation6 + $0x1], 1 }
 0xa24   :  { %1493 = vsyncpa [#allocation8], 1 }
 0xa25   :  { %1495 = vsyncpa [#allocation8 + $0x1], 1 }

// kernel: tpu_custom_call.1
= control target key start
LH: loop header
LB: loop body
LE: loop exit
PB: predicated region body
PF: predicated region fallthrough
CT: control target
= control target key end

     0   :  { %s2425_s0 = inlined_call_operand.vmem [shape: f32[2,8,32], index: 0, kind: input, shape index: {}]   ;;  %s2426_s1 = inlined_call_operand.vmem [shape: f32[2,8,32], index: 1, kind: input, shape index: {}]   ;;  %s2427_s2 = inlined_call_operand.vmem [shape: f32[1,32], index: 2, kind: input, shape index: {}]   ;;  %s2428_s3 = inlined_call_operand.vmem [shape: f32[1,32], index: 3, kind: input, shape index: {}]   ;;  %s2429_s4 = inlined_call_operand.vmem [shape: bf16[32,96], index: 4, kind: input, shape index: {}]   ;;  %s2430_s5 = inlined_call_operand.vmem [shape: bf16[32,32], index: 5, kind: input, shape index: {}]   ;;  %s2431_s6 = inlined_call_operand.vmem [shape: f32[1,32], index: 6, kind: input, shape index: {}]   ;;  %s2432_s7 = inlined_call_operand.vmem [shape: f32[1,32], index: 7, kind: input, shape index: {}]   ;;  %s2433_s8 = inlined_call_operand.vmem [shape: f32[1,32], index: 8, kind: input, shape index: {}]   ;;  %s2434_s9 = inlined_call_operand.vmem [shape: bf16[32,128], index: 9, kind: input, shape index: {}]   ;;  %s2435_s10 = inlined_call_operand.vmem [shape: f32[1,128], index: 10, kind: input, shape index: {}]   ;;  %s2436_s11 = inlined_call_operand.vmem [shape: bf16[128,32], index: 11, kind: input, shape index: {}]   ;;  %s2437_s12 = inlined_call_operand.vmem [shape: f32[1,32], index: 12, kind: input, shape index: {}]   ;;  %s2438_s13 = inlined_call_operand.hbm [shape: f32[2,8,32], index: 13, kind: output, shape index: {0}]   ;;  %s2439_s14 = inlined_call_operand.hbm [shape: f32[2,4,8,8], index: 14, kind: output, shape index: {1}]  }
   0x1   :  { %2443 = sst [smem:[#allocation12_spill]] %s2425_s0 }
   0x2   :  { %2444 = sst [smem:[#allocation13_spill]] %s2426_s1 }
   0x3   :  { %2445 = sst [smem:[#allocation14_spill]] %s2427_s2 }
   0x4   :  { %2446 = sst [smem:[#allocation15_spill]] %s2428_s3 }
   0x5   :  { %2447 = sst [smem:[#allocation16_spill]] %s2429_s4 }
   0x6   :  { %2448 = sst [smem:[#allocation17_spill]] %s2430_s5 }
   0x7   :  { %2449 = sst [smem:[#allocation18_spill]] %s2431_s6 }
   0x8   :  { %20 = vsyncpa [#allocation6], 0 }
   0x9   :  { %22 = vsyncpa [#allocation6 + $0x1], 0 }
   0xa   :  { %23 = vsyncpa [#allocation8], 0 }
   0xb   :  { %25 = vsyncpa [#allocation8 + $0x1], 0  ;;  %s2080_s29 = smov 0   ;;  %s2082_s30 = smov 0  }
   0xc   :  { %s2084_s15 = smov 0   ;;  %s2086_s16 = smov 0  }
   0xd   :  { %s2088_s17 = smov 0   ;;  %s2090_s18 = smov 0  }
   0xe LB: > { %s1582_s19 = sadd.s32 4294967295, %s1983_s18   ;;  %s1583_s20 = sadd.s32 4294967294, %s1983_s18   ;;  %s1983_s18 = sphi %s2090_s18, %s31_s18   ;;  %s1979_s17 = sphi %s2088_s17, %s2468_s17   ;;  %s1975_s16 = sphi %s2086_s16, %s2467_s16   ;;  %s1971_s15 = sphi %s2084_s15, %s2466_s15   ;;  %s1967_s30 = sphi %s2082_s30, %s2465_s30   ;;  %s1963_s29 = sphi %s2080_s29, %s2464_s29  }
   0xf   : > { %s43_s21 = sadd.s32 1, %s1979_s17  ;;  %s337_s22 = sadd.s32 1, %s1971_s15 }
  0x10   : > { %p45_p0 = scmp.ge.s32.totalorder %s43_s21, 2  ;;  %p347_p1 = scmp.ne.s32.totalorder %s1971_s15, %s1967_s30 }
  0x11   : > { %p348_p2 = scmp.eq.s32.totalorder %s1582_s19, 1  ;;  %p353_p3 = scmp.ne.s32.totalorder %s1967_s30, %s1963_s29 }
  0x12   : > { %s2470_s21 = smov (%p45_p0, %s43_s21), 0  ;;  %p354_p5 = scmp.eq.s32.totalorder %s1583_s20, 1 }
  0x13   : > { %2450 = sst [smem:[#allocation11_spill]] %s2470_s21  ;;  %p2120_p4 = por %p348_p2, %p347_p1 }
  0x14   : > { %s332_s24 = ssub.s32 %s1979_s17, %s2470_s21  ;;  %p1586_p6 = scmp.ge.s32.totalorder %s1983_s18, 1 }
  0x15   : > { %p335_p7 = scmp.eq.s32.totalorder %s332_s24, 0  ;;  %p2127_p8 = por %p354_p5, %p353_p3 }
  0x16   : > { %p450_p9 = scmp.lt.s32.totalorder %s1983_s18, 3 }
  0x17   : > { %s2133_s26 = scalar_select %p335_p7, %s1971_s15, %s337_s22  }
  0x18   : > { %p451_p10 = pnand %p1586_p6, %p450_p9 }
  0x19   : > { %p507_p11 = scmp.lt.s32.totalorder (!%p451_p10), %s1975_s16, 1  ;;  %vm526_vm0 = vcmask (!%p451_p10), 261120   ;;  %s2453_s0 = sld [smem:[#allocation12_spill]] (!%p451_p10)  ;;  %v1985_v8 = vmov (!%p451_p10), 0.0   ;;  %vm1986_vm1 = vmmov (!%p451_p10), 0   ;;  %vm622_vm2 = vcmask (!%p451_p10), 60416  }
  0x1a   : > { %454 = sbr.rel (%p451_p10) target bundleno = 2577 (0xa11), region = 72  ;;  %s2454_s4 = sld [smem:[#allocation16_spill]] (!%p451_p10)  ;;  %1667 = vmatprep.subr.bf16.mxu0 (!%p451_p10), %v1985_v8  ;;  %1671 = vmatprep.mubr.msk.bf16.mxu0 (!%p451_p10), %vm1986_vm1, %v1985_v8  ;;  %vm698_vm3 = vcmask (!%p451_p10), 64512   ;;  %v690_v44 = vlaneseq (!%p451_p10)  ;;  %v1994_v47 = vmov (!%p451_p10), -inf   ;;  %vm938_vm5 = vcmask (!%p451_p10), 1043456  }
  0x1b   : > { %1687 = vmatprep.subr.bf16.mxu1 (!%p451_p10), %v1985_v8  ;;  %1689 = vmatprep.mubr.msk.bf16.mxu1 (!%p451_p10), %vm1986_vm1, %v1985_v8  ;;  %s2455_s2 = sld [smem:[#allocation14_spill]] (!%p451_p10)  ;;  %s2456_s3 = sld [smem:[#allocation15_spill]] (!%p451_p10)  ;;  %vm1136_vm6 = vcmask (!%p451_p10), 130048   ;;  %vm1139_vm7 = vcmask (!%p451_p10), 195584  }
  0x1c   : > { %s1987_s20 = smov (!%p451_p10), 80   ;;  %s1988_s21 = smov (!%p451_p10), 96   ;;  %v691_v45 = vshrl.u32 (!%p451_p10), %v690_v44, 7  ;;  %v695_v46 = vand.u32 (!%p451_p10), 127, %v690_v44 }
  0x1d   : > { %s1990_s22 = smov (!%p451_p10), 120   ;;  %s1991_s19 = smov (!%p451_p10), 72  }
  0x1e   : > { %vm696_vm4 = vcmp.ge.s32.totalorder (!%p451_p10), %v691_v45, %v695_v46  ;;  %s2457_s5 = sld [smem:[#allocation17_spill]] (!%p451_p10)  ;;  %s2459_s1 = sld [smem:[#allocation13_spill]] (!%p451_p10) }
  0x1f   : > { %v697_v48 = vsel (!%p451_p10), %vm696_vm4, 0.0, %v1994_v47  ;;  %s2460_s6 = sld [smem:[#allocation18_spill]] (!%p451_p10) }
  0x20   : > { %v1837_v7 = vld [vmem:[%s2454_s4] sm:$0xff] (!%p451_p10)   ;;  %v1838_v9 = vld [vmem:[%s2454_s4 + $0x8] sm:$0xff] (!%p451_p10)  }
  0x21   : > { %s2137_s27 = scalar_select %p507_p11, %s1975_s16, 1  ;;  %1668 = vmatpush3.bf16.msra.mxu0 %v1837_v7  ;;  %v1591_v14 = vld [vmem:[%s2455_s2] ss:$0 sm:$0xff] }
  0x22   : > { %1669 = vmatprep.subr.bf16.mxu0 %v1985_v8  ;;  %v1592_v16 = vld [vmem:[%s2456_s3] ss:$0 sm:$0xff] }
  0x23   : > { %s2441_s28 = sshll.u32 %s2137_s27, 3 }
  0x24   : > { %s510_s24 = scalar_lea.vmem %s2453_s0, %s2441_s28  ;;  %s1992_s28 = smov 112  }
  0x25   : > { %v523_v0 = vld [vmem:[%s510_s24] sm:$0xff]  ;;  %1670 = vmatpush3.bf16.msra.mxu0 %v1838_v9  ;;  %s1989_s24 = smov 88   ;;  %s1999_s0 = smov 16  }
  0x26   : > { %v527_v1 = vsel %vm526_vm0, %v523_v0, 0.0  ;;  %1675 = vmatprep.subr.bf16.mxu0 %v1985_v8 }
  0x27   : > { %528 = vadd.xlane.f32.xlu0 %v527_v1 }
  0xb4   : > { %v529_v2 = vpop.xlane.xlu0 %528 }
  0xb5   : > { %v531_v3 = vmul.f32 0.03125, %v529_v2 }
  0xb7   : > { %v532_v4 = vsub.f32 %v523_v0, %v531_v3 }
  0xb9   : > { %v533_v5 = vmul.f32 %v532_v4, %v532_v4 }
  0xbb   : > { %v534_v6 = vsel %vm526_vm0, %v533_v5, 0.0 }
  0xbc   : > { %535 = vadd.xlane.f32.xlu0 %v534_v6 }
 0x149   : > { %v536_v10 = vpop.xlane.xlu0 %535 }
 0x14a   : > { %v537_v11 = vmul.f32 0.03125, %v536_v10 }
 0x14c   : > { %v538_v12 = vadd.f32 1e-05, %v537_v11 }
 0x14e   : > { %1851 = vrsqrt.f32 %v538_v12 }
 0x158   : > { %v1852_v13 = vpop.eup %1851 }
 0x159   : > { %v540_v15 = vmul.f32 %v1852_v13, %v532_v4 }
 0x15b   : > { %v547_v17 = vmul.f32 %v1591_v14, %v540_v15 }
 0x15d   : > { %v554_v18 = vadd.f32 %v1592_v16, %v547_v17 }
 0x15f   : > { %v555_v19 = vpack.c.bf16 %v554_v18, %v554_v18 }
 0x161   : > { %1672 = vmatmul.mubr.msk.bf16.vlgmr.msra.gmra.mrb[0].mxu0 %vm526_vm0, %v555_v19 }
 0x162   : > { %1677 = vmatprep.mubr.msk.bf16.mxu0 %vm1986_vm1, %v1985_v8 }
 0x234   : > { %v609_v20 = vpop.f32.mrb[0].mxu0 }
 0x235   : > { %v2170_v21 = vpack.c.bf16 %v609_v20, %v609_v20  ;;  %v1673_v22 = vpop.f32.mrb[1].mxu0 }
 0x236   : > { %v612_v23 = vpop.f32.mrb[2].mxu0 }
 0x237   : > { %644 = vrot.lane.b32.xlu0 %v2170_v21, %s1987_s20  ;;  %619 = vrot.lane.b32.xlu1 %v2170_v21, %s1988_s21  ;;  %v1674_v24 = vpop.f32.mrb[3].mxu0  ;;  %628 = vst.msk [vmem:[#allocation2] sm:$0xf] %vm622_vm2, %v2170_v21  ;;  %s1993_s20 = smov 104  }
 0x23b   : > { %629 = vrot.lane.b32.xlu1 %v2170_v21, %s1989_s24 }
 0x23e   : > { %v677_v36 = vld [vmem:[#allocation2] sm:$0xf] }
 0x23f   : > { %639 = vrot.lane.b32.xlu1 %v2170_v21, %s1990_s22  ;;  %s1995_s22 = smov 64  }
 0x243   : > { %659 = vrot.lane.b32.xlu1 %v2170_v21, %s1991_s19  ;;  %s1996_s19 = smov 48  }
 0x247   : > { %654 = vrot.lane.b32.xlu1 %v2170_v21, %s1992_s28  ;;  %s2209_s28 = sand.u32 1, %s1967_s30  }
 0x248   : > { %s1588_s21 = sshll.u32 %s2209_s28, 5 }
 0x249   : > { %s2212_s24 = scalar_lea.vmem [#allocation7], %s1588_s21  ;;  %s1998_s21 = smov 56  }
 0x24b   : > { %669 = vrot.lane.b32.xlu1 %v2170_v21, %s1993_s20  ;;  %s1997_s20 = smov 40  }
 0x2a9   : > { %v645_v25 = vpop.permute.xlu0 %644  ;;  %v620_v26 = vpop.permute.xlu1 %619 }
 0x2aa   : > { %648 = vst.msk [vmem:[#allocation3 + $0x8] sm:$0xf] %vm622_vm2, %v645_v25  ;;  %623 = vst.msk [vmem:[#allocation3] sm:$0xf] %vm622_vm2, %v620_v26 }
 0x2ad   : > { %v630_v27 = vpop.permute.xlu1 %629 }
 0x2ae   : > { %633 = vst.msk [vmem:[#allocation3 + $0x4] sm:$0xf] %vm622_vm2, %v630_v27 }
 0x2b1   : > { %v640_v28 = vpop.permute.xlu1 %639  ;;  %v681_v29 = vld [vmem:[#allocation3] sm:$0xf]  ;;  %v683_v30 = vld [vmem:[#allocation3 + $0x8] sm:$0xf] }
 0x2b2   : > { %643 = vst.msk [vmem:[#allocation2 + $0x4] sm:$0xf] %vm622_vm2, %v640_v28  ;;  %v703_v31 = vsel %vm698_vm3, %v681_v29, 0  ;;  %v795_v32 = vsel %vm698_vm3, %v683_v30, 0 }
 0x2b3   : > { %1676 = vmatpush3.bf16.xpose.msra.mxu0 %v703_v31  ;;  %1688 = vmatpush3.bf16.xpose.msra.mxu1 %v795_v32 }
 0x2b4   : > { %1681 = vmatprep.subr.bf16.mxu0 %v1985_v8  ;;  %1699 = vmatprep.subr.bf16.mxu1 %v1985_v8 }
 0x2b5   : > { %v660_v33 = vpop.permute.xlu1 %659  ;;  %v682_v34 = vld [vmem:[#allocation3 + $0x4] sm:$0xf] }
 0x2b6   : > { %663 = vst.msk [vmem:[#allocation3 + $0xc] sm:$0xf] %vm622_vm2, %v660_v33  ;;  %v749_v37 = vsel %vm698_vm3, %v682_v34, 0 }
 0x2b9   : > { %v655_v35 = vpop.permute.xlu1 %654  ;;  %v678_v40 = vld [vmem:[#allocation2 + $0x4] sm:$0xf] }
 0x2ba   : > { %658 = vst.msk [vmem:[#allocation2 + $0x8] sm:$0xf] %vm622_vm2, %v655_v35  ;;  %1678 = vmatmul.mubr.msk.bf16.vlgmr.msra.gmra.mrb[4].mxu0 %vm698_vm3, %v677_v36 }
 0x2bb   : > { %1682 = vmatpush3.bf16.xpose.msra.mxu0 %v749_v37  ;;  %1683 = vmatprep.mubr.msk.bf16.mxu0 %vm1986_vm1, %v1985_v8 }
 0x2bc   : > { %1693 = vmatprep.subr.bf16.mxu0 %v1985_v8 }
 0x2bd   : > { %v670_v38 = vpop.permute.xlu1 %669  ;;  %v684_v39 = vld [vmem:[#allocation3 + $0xc] sm:$0xf] }
 0x2be   : > { %673 = vst.msk [vmem:[#allocation2 + $0xc] sm:$0xf] %vm622_vm2, %v670_v38  ;;  %v841_v42 = vsel %vm698_vm3, %v684_v39, 0 }
 0x2c1   : > { %v679_v41 = vld [vmem:[#allocation2 + $0x8] sm:$0xf] }
 0x2c2   : > { %1684 = vmatmul.mubr.msk.bf16.vlgmr.msra.gmra.mrb[8].mxu0 %vm698_vm3, %v678_v40  ;;  %1690 = vmatmul.mubr.msk.bf16.vlgmr.msra.gmra.mrb[0].mxu1 %vm698_vm3, %v679_v41 }
 0x2c3   : > { %1694 = vmatpush3.bf16.xpose.msra.mxu0 %v841_v42  ;;  %1695 = vmatprep.mubr.msk.bf16.mxu0 %vm1986_vm1, %v1985_v8 }
 0x2c4   : > { %1701 = vmatprep.mubr.msk.bf16.mxu1 %vm1986_vm1, %v1985_v8  ;;  %1705 = vmatprep.subr.bf16.mxu0 %v1985_v8 }
 0x2c5   : > { %v680_v43 = vld [vmem:[#allocation2 + $0xc] sm:$0xf] }
 0x2ca   : > { %1696 = vmatmul.mubr.msk.bf16.vlgmr.msra.gmra.mrb[12].mxu0 %vm698_vm3, %v680_v43 }
 0x2cb   : > { %1707 = vmatprep.mubr.msk.bf16.mxu0 %vm1986_vm1, %v1985_v8 }
 0x38d   : > { %v739_v49 = vpop.f32.mrb[4].mxu0 }
 0x38e   : > { %v740_v50 = vadd.f32 %v739_v49, %v697_v48  ;;  %v1679_v51 = vpop.f32.mrb[5].mxu0 }
 0x38f   : > { %v742_v52 = vpop.f32.mrb[6].mxu0 }
 0x390   : > { %883 = vst.msk [vmem:[%s2212_s24] sm:$0xff] %vm698_vm3, %v740_v50  ;;  %v1680_v53 = vpop.f32.mrb[7].mxu0  ;;  %v887_v54 = vsel %vm698_vm3, %v740_v50, -inf }
 0x391   : > { %888 = vmax.xlane.f32.xlu1 %v887_v54 }
 0x395   : > { %v785_v55 = vpop.f32.mrb[8].mxu0  ;;  %v831_v56 = vpop.f32.mrb[0].mxu1 }
 0x396   : > { %v786_v57 = vadd.f32 %v785_v55, %v697_v48  ;;  %v832_v58 = vadd.f32 %v831_v56, %v697_v48  ;;  %v1685_v59 = vpop.f32.mrb[9].mxu0  ;;  %v1691_v60 = vpop.f32.mrb[1].mxu1 }
 0x397   : > { %v788_v61 = vpop.f32.mrb[10].mxu0  ;;  %v834_v62 = vpop.f32.mrb[2].mxu1 }
 0x398   : > { %884 = vst.msk [vmem:[%s2212_s24 + $0x8] sm:$0xff] %vm698_vm3, %v786_v57  ;;  %885 = vst.msk [vmem:[%s2212_s24 + $0x10] sm:$0xff] %vm698_vm3, %v832_v58  ;;  %v1686_v63 = vpop.f32.mrb[11].mxu0  ;;  %v1692_v0 = vpop.f32.mrb[3].mxu1  ;;  %v893_v1 = vsel %vm698_vm3, %v832_v58, -inf  ;;  %v890_v2 = vsel %vm698_vm3, %v786_v57, -inf }
 0x399   : > { %894 = vmax.xlane.f32.xlu1 %v893_v1  ;;  %891 = vmax.xlane.f32.xlu0 %v890_v2  ;;  %v1839_v62 = vld [vmem:[%s2457_s5] sm:$0xff]   ;;  %v1840_v0 = vld [vmem:[%s2457_s5 + $0x8] sm:$0xff]  }
 0x39d   : > { %v877_v3 = vpop.f32.mrb[12].mxu0 }
 0x39e   : > { %v878_v4 = vadd.f32 %v877_v3, %v697_v48  ;;  %v1697_v5 = vpop.f32.mrb[13].mxu0 }
 0x39f   : > { %v880_v6 = vpop.f32.mrb[14].mxu0 }
 0x3a0   : > { %886 = vst.msk [vmem:[%s2212_s24 + $0x18] sm:$0xff] %vm698_vm3, %v878_v4  ;;  %v1698_v7 = vpop.f32.mrb[15].mxu0  ;;  %v896_v9 = vsel %vm698_vm3, %v878_v4, -inf }
 0x3a1   : > { %897 = vmax.xlane.f32.xlu0 %v896_v9 }
 0x3aa   : > { %624 = vrot.lane.b32.xlu1 %v2170_v21, %s1995_s22  ;;  %s2442_s22 = smov 8  }
 0x41e   : > { %v889_v10 = vpop.xlane.xlu1 %888 }
 0x41f   : > { %v899_v11 = vsub.f32 %v740_v50, %v889_v10 }
 0x421   : > { %v903_v12 = vmul.f32 1.442695, %v899_v11 }
 0x423   : > { %1853 = vpow2.f32 %v903_v12 }
 0x426   : > { %v895_v13 = vpop.xlane.xlu1 %894  ;;  %v892_v14 = vpop.xlane.xlu0 %891 }
 0x427   : > { %v901_v15 = vsub.f32 %v832_v58, %v895_v13  ;;  %v900_v16 = vsub.f32 %v786_v57, %v892_v14 }
 0x429   : > { %v907_v17 = vmul.f32 1.442695, %v901_v15  ;;  %v905_v18 = vmul.f32 1.442695, %v900_v16 }
 0x42a   : > { %v625_v19 = vpop.permute.xlu1 %624 }
 0x42b   : > { %1855 = vpow2.f32 %v907_v17  ;;  %627 = vst.msk [vmem:[#allocation4] sm:$0xf] %vm622_vm2, %v625_v19 }
 0x42c   : > { %1857 = vpow2.f32 %v905_v18 }
 0x42d   : > { %v1854_v20 = vpop.eup %1853 }
 0x42e   : > { %v898_v22 = vpop.xlane.xlu0 %897  ;;  %v911_v23 = vsel %vm698_vm3, %v1854_v20, 0.0 }
 0x42f   : > { %v902_v24 = vsub.f32 %v878_v4, %v898_v22  ;;  %912 = vadd.xlane.f32.xlu1 %v911_v23 }
 0x431   : > { %v909_v25 = vmul.f32 1.442695, %v902_v24  ;;  %v1605_v24 = vld [vmem:[%s2460_s6] ss:$0 sm:$0xff] }
 0x432   : > { %v685_v26 = vld [vmem:[#allocation4] sm:$0xf] }
 0x433   : > { %1859 = vpow2.f32 %v909_v25  ;;  %v940_v27 = vsel %vm938_vm5, %v685_v26, 0 }
 0x434   : > { %1700 = vmatpush3.bf16.msra.mxu1 %v940_v27 }
 0x435   : > { %v1856_v28 = vpop.eup %1855  ;;  %1711 = vmatprep.subr.bf16.mxu1 %v1985_v8 }
 0x436   : > { %v1858_v29 = vpop.eup %1857  ;;  %v917_v30 = vsel %vm698_vm3, %v1856_v28, 0.0 }
 0x437   : > { %918 = vadd.xlane.f32.xlu1 %v917_v30  ;;  %v914_v31 = vsel %vm698_vm3, %v1858_v29, 0.0 }
 0x438   : > { %915 = vadd.xlane.f32.xlu0 %v914_v31 }
 0x43d   : > { %v1860_v32 = vpop.eup %1859 }
 0x43e   : > { %v920_v33 = vsel %vm698_vm3, %v1860_v32, 0.0 }
 0x43f   : > { %921 = vadd.xlane.f32.xlu0 %v920_v33 }
 0x448   : > { %649 = vrot.lane.b32.xlu1 %v2170_v21, %s1996_s19  ;;  %s2001_s19 = smov 24  }
 0x44c   : > { %664 = vrot.lane.b32.xlu1 %v2170_v21, %s1997_s20 }
 0x455   : > { %634 = vrot.lane.b32.xlu0 %v2170_v21, %s1998_s21 }
 0x4bc   : > { %v913_v34 = vpop.xlane.xlu1 %912 }
 0x4bd   : > { %1861 = vrcp.f32 %v913_v34 }
 0x4c4   : > { %v919_v35 = vpop.xlane.xlu1 %918 }
 0x4c5   : > { %1863 = vrcp.f32 %v919_v35  ;;  %v916_v37 = vpop.xlane.xlu0 %915 }
 0x4c6   : > { %1865 = vrcp.f32 %v916_v37 }
 0x4c7   : > { %v1862_v36 = vpop.eup %1861 }
 0x4c8   : > { %v927_v38 = vmul.f32 %v1862_v36, %v1854_v20  ;;  %v650_v39 = vpop.permute.xlu1 %649 }
 0x4c9   : > { %653 = vst.msk [vmem:[#allocation4 + $0x8] sm:$0xf] %vm622_vm2, %v650_v39  ;;  %v1842_v39 = vld [vmem:[%s2434_s9 + $0x8] sm:$0xff]  }
 0x4ca   : > { %v931_v40 = vpack.c.bf16 %v927_v38, %v927_v38  ;;  %v1841_v38 = vld [vmem:[%s2434_s9] sm:$0xff]  }
 0x4cc   : > { %1702 = vmatmul.mubr.msk.bf16.vlgmr.msra.gmra.mrb[4].mxu1 %vm698_vm3, %v931_v40  ;;  %v665_v41 = vpop.permute.xlu1 %664  ;;  %v922_v42 = vpop.xlane.xlu0 %921  ;;  %v1843_v40 = vld [vmem:[%s2436_s11] sm:$0xff]  }
 0x4cd   : > { %668 = vst.msk [vmem:[#allocation4 + $0xc] sm:$0xf] %vm622_vm2, %v665_v41  ;;  %1713 = vmatprep.mubr.msk.bf16.mxu1 %vm1986_vm1, %v1985_v8  ;;  %1867 = vrcp.f32 %v922_v42  ;;  %v1844_v41 = vld [vmem:[%s2436_s11 + $0x8] sm:$0xff]   ;;  %v1845_v42 = vld [vmem:[%s2436_s11 + $0x10] sm:$0xff]  }
 0x4cf   : > { %v1864_v21 = vpop.eup %1863 }
 0x4d0   : > { %v929_v43 = vmul.f32 %v1864_v21, %v1856_v28  ;;  %v635_v44 = vpop.permute.xlu0 %634  ;;  %v687_v45 = vld [vmem:[#allocation4 + $0x8] sm:$0xf]  ;;  %v1866_v48 = vpop.eup %1865 }
 0x4d1   : > { %638 = vst.msk [vmem:[#allocation4 + $0x4] sm:$0xf] %vm622_vm2, %v635_v44  ;;  %v1032_v46 = vsel %vm938_vm5, %v687_v45, 0  ;;  %v928_v49 = vmul.f32 %v1866_v48, %v1858_v29  ;;  %v1610_v48 = vld [vmem:[%s2433_s8] ss:$0 sm:$0xff] }
 0x4d2   : > { %1712 = vmatpush3.bf16.msra.mxu1 %v1032_v46  ;;  %v933_v47 = vpack.c.bf16 %v929_v43, %v929_v43  ;;  %v1609_v46 = vld [vmem:[%s2432_s7] ss:$0 sm:$0xff] }
 0x4d3   : > { %1723 = vmatprep.subr.bf16.mxu1 %v1985_v8  ;;  %v932_v53 = vpack.c.bf16 %v928_v49, %v928_v49 }
 0x4d4   : > { %v688_v52 = vld [vmem:[#allocation4 + $0xc] sm:$0xf] }
 0x4d5   : > { %1714 = vmatmul.mubr.msk.bf16.vlgmr.msra.gmra.mrb[8].mxu1 %vm698_vm3, %v933_v47  ;;  %v1078_v55 = vsel %vm938_vm5, %v688_v52, 0  ;;  %v1846_v52 = vld [vmem:[%s2436_s11 + $0x18] sm:$0xff]  }
 0x4d6   : > { %1727 = vmatprep.mubr.msk.bf16.mxu1 %vm1986_vm1, %v1985_v8  ;;  %1724 = vmatpush3.bf16.msra.mxu1 %v1839_v62 }
 0x4d7   : > { %v1868_v54 = vpop.eup %1867  ;;  %1725 = vmatprep.subr.bf16.mxu1 %v1985_v8 }
 0x4d8   : > { %v686_v50 = vld [vmem:[#allocation4 + $0x4] sm:$0xf]  ;;  %v930_v56 = vmul.f32 %v1868_v54, %v1860_v32  ;;  %v1848_v54 = vld [vmem:[%s2436_s11 + $0x28] sm:$0xff]  }
 0x4d9   : > { %v986_v51 = vsel %vm938_vm5, %v686_v50, 0 }
 0x4da   : > { %1706 = vmatpush3.bf16.msra.mxu0 %v986_v51  ;;  %v934_v57 = vpack.c.bf16 %v930_v56, %v930_v56  ;;  %1726 = vmatpush3.bf16.msra.mxu1 %v1840_v0  ;;  %v1850_v56 = vld [vmem:[%s2436_s11 + $0x38] sm:$0xff]  }
 0x4db   : > { %1717 = vmatprep.subr.bf16.mxu0 %v1985_v8  ;;  %1739 = vmatprep.subr.bf16.mxu1 %v1985_v8 }
 0x4dd   : > { %1708 = vmatmul.mubr.msk.bf16.vlgmr.msra.gmra.mrb[16].mxu0 %vm698_vm3, %v932_v53  ;;  %v1847_v53 = vld [vmem:[%s2436_s11 + $0x20] sm:$0xff]  }
 0x4de   : > { %1718 = vmatpush3.bf16.msra.mxu0 %v1078_v55  ;;  %1719 = vmatprep.mubr.msk.bf16.mxu0 %vm1986_vm1, %v1985_v8  ;;  %v1849_v55 = vld [vmem:[%s2436_s11 + $0x30] sm:$0xff]  }
 0x4df   : > { %1731 = vmatprep.subr.bf16.mxu0 %v1985_v8 }
 0x4e5   : > { %1720 = vmatmul.mubr.msk.bf16.vlgmr.msra.gmra.mrb[20].mxu0 %vm698_vm3, %v934_v57  ;;  %v1611_v57 = vld [vmem:[%s2435_s10] ss:$0 sm:$0xff] }
 0x4e6   : > { %1735 = vmatprep.mubr.msk.bf16.mxu0 %vm1986_vm1, %v1985_v8  ;;  %1732 = vmatpush3.bf16.msra.mxu0 %v1841_v38 }
 0x4e7   : > { %1733 = vmatprep.subr.bf16.mxu0 %v1985_v8 }
 0x4ea   : > { %1734 = vmatpush3.bf16.msra.mxu0 %v1842_v39 }
 0x59f   : > { %v976_v58 = vpop.f32.mrb[4].mxu1 }
 0x5a0   : > { %v1703_v59 = vpop.f32.mrb[5].mxu1  ;;  %v1120_v17 = vpack.c.bf16 %v976_v58, %v976_v58 }
 0x5a1   : > { %v979_v60 = vpop.f32.mrb[6].mxu1 }
 0x5a2   : > { %v1704_v61 = vpop.f32.mrb[7].mxu1 }
 0x5a8   : > { %v1068_v63 = vpop.f32.mrb[8].mxu1 }
 0x5a9   : > { %v1122_v1 = vpack.c.bf16 %v1068_v63, %v1068_v63  ;;  %v1715_v2 = vpop.f32.mrb[9].mxu1 }
 0x5aa   : > { %v1071_v3 = vpop.f32.mrb[10].mxu1 }
 0x5ab   : > { %1128 = vrot.lane.b32.xlu1 %v1122_v1, %s1999_s0  ;;  %v1716_v4 = vpop.f32.mrb[11].mxu1  ;;  %s2458_s0 = sshll.u32 %s2137_s27, 3  ;;  %s2002_s27 = smov [#allocation7]  }
 0x5ac   : > { %s1877_s3 = sshll.u32 %s2002_s27, 4  ;;  %s1878_s3 = int_to_ptr.vmem [resolvable:$false] %s1877_s3 }
 0x5b0   : > { %v1022_v5 = vpop.f32.mrb[16].mxu0 }
 0x5b1   : > { %v1121_v6 = vpack.c.bf16 %v1022_v5, %v1022_v5  ;;  %v1709_v7 = vpop.f32.mrb[17].mxu0 }
 0x5b2   : > { %v1025_v9 = vpop.f32.mrb[18].mxu0 }
 0x5b3   : > { %1125 = vrot.lane.b32.xlu0 %v1121_v6, %s2442_s22  ;;  %v1710_v10 = vpop.f32.mrb[19].mxu0  ;;  %s1460_s22 = sshll.u32 %s2212_s24, 4  ;;  %s1879_s24 = scalar_lea.vmem %s1878_s3, 1024  ;;  %s2334_s22 = int_to_ptr.vmem [resolvable:$true] %s1460_s22 }
 0x5b4   : > { %s1873_s2 = scalar_lea.vmem %s2334_s22, 512  ;;  %p1880_p1 = scmp.lt.s32.totalorder %s2334_s22, %s1878_s3 }
 0x5b5   : > { %p1874_p12 = scmp.ne.s32.totalorder %s2334_s22, %s1873_s2  ;;  %p1881_p2 = scmp.lt.s32.totalorder %s1879_s24, %s1873_s2 }
 0x5b7   : > { %p1875_p13 = pnand %p1874_p12, %p2120_p4  ;;  %p1882_p3 = por %p1881_p2, %p1880_p1 }
 0x5b8   : > { %v1114_v11 = vpop.f32.mrb[20].mxu0 }
 0x5b9   : > { %v1123_v12 = vpack.c.bf16 %v1114_v11, %v1114_v11  ;;  %v1721_v13 = vpop.f32.mrb[21].mxu0  ;;  %p1876_p0 = pneg %p1875_p13 }
 0x5ba   : > { %v1117_v14 = vpop.f32.mrb[22].mxu0 }
 0x5bb   : > { %1131 = vrot.lane.b32.xlu0 %v1123_v12, %s2001_s19  ;;  %v1722_v15 = vpop.f32.mrb[23].mxu0  ;;  %s517_s19 = scalar_lea.vmem %s2459_s1, %s2458_s0  ;;  %s1632_s1 = sshll.u32 %s1975_s16, 9 }
 0x5bc   : > { %v1208_v25 = vld [vmem:[%s517_s19] sm:$0xff]  ;;  %s2340_s21 = scalar_lea.hbm %s2439_s14, %s1632_s1  ;;  %p1883_p5 = pnand %p1882_p3, %p1876_p0 }
 0x61d   : > { %v1129_v19 = vpop.permute.xlu1 %1128 }
 0x625   : > { %v1126_v16 = vpop.permute.xlu0 %1125 }
 0x626   : > { %v1135_v18 = vsel %vm698_vm3, %v1120_v17, %v1126_v16 }
 0x627   : > { %v1138_v20 = vsel %vm1136_vm6, %v1135_v18, %v1129_v19 }
 0x62d   : > { %v1132_v22 = vpop.permute.xlu0 %1131 }
 0x62e   : > { %v1141_v23 = vsel %vm1139_vm7, %v1138_v20, %v1132_v22 }
 0x62f   : > { %1728 = vmatmul.mubr.msk.bf16.vlgmr.msra.gmra.mrb[12].mxu1 %vm526_vm0, %v1141_v23 }
 0x630   : > { %1755 = vmatprep.mubr.msk.bf16.mxu1 %vm1986_vm1, %v1985_v8  ;;  %1740 = vmatpush3.bf16.msra.mxu1 %v1843_v40 }
 0x631   : > { %1741 = vmatprep.subr.bf16.mxu1 %v1985_v8 }
 0x634   : > { %1742 = vmatpush3.bf16.msra.mxu1 %v1844_v41 }
 0x635   : > { %1743 = vmatprep.subr.bf16.mxu1 %v1985_v8 }
 0x638   : > { %1744 = vmatpush3.bf16.msra.mxu1 %v1845_v42 }
 0x639   : > { %1745 = vmatprep.subr.bf16.mxu1 %v1985_v8 }
 0x63c   : > { %1746 = vmatpush3.bf16.msra.mxu1 %v1846_v52 }
 0x63d   : > { %1747 = vmatprep.subr.bf16.mxu1 %v1985_v8 }
 0x640   : > { %1748 = vmatpush3.bf16.msra.mxu1 %v1847_v53 }
 0x641   : > { %1749 = vmatprep.subr.bf16.mxu1 %v1985_v8 }
 0x644   : > { %1750 = vmatpush3.bf16.msra.mxu1 %v1848_v54 }
 0x645   : > { %1751 = vmatprep.subr.bf16.mxu1 %v1985_v8 }
 0x648   : > { %1752 = vmatpush3.bf16.msra.mxu1 %v1849_v55 }
 0x649   : > { %1753 = vmatprep.subr.bf16.mxu1 %v1985_v8 }
 0x64c   : > { %1754 = vmatpush3.bf16.msra.mxu1 %v1850_v56 }
 0x702   : > { %v1202_v26 = vpop.f32.mrb[12].mxu1 }
 0x703   : > { %v1203_v27 = vadd.f32 %v1605_v24, %v1202_v26  ;;  %v1729_v28 = vpop.f32.mrb[13].mxu1 }
 0x704   : > { %v1205_v29 = vpop.f32.mrb[14].mxu1 }
 0x705   : > { %v2279_v30 = vadd.f32 %v1208_v25, %v1203_v27  ;;  %v1730_v31 = vpop.f32.mrb[15].mxu1 }
 0x707   : > { %v1212_v32 = vsel %vm526_vm0, %v2279_v30, 0.0 }
 0x708   : > { %1213 = vadd.xlane.f32.xlu1 %v1212_v32 }
 0x795   : > { %v1214_v33 = vpop.xlane.xlu1 %1213 }
 0x796   : > { %v1216_v34 = vmul.f32 0.03125, %v1214_v33 }
 0x798   : > { %v1217_v35 = vsub.f32 %v2279_v30, %v1216_v34 }
 0x79a   : > { %v1218_v36 = vmul.f32 %v1217_v35, %v1217_v35 }
 0x79c   : > { %v1219_v37 = vsel %vm526_vm0, %v1218_v36, 0.0 }
 0x79d   : > { %1220 = vadd.xlane.f32.xlu0 %v1219_v37 }
 0x82a   : > { %v1221_v21 = vpop.xlane.xlu0 %1220 }
 0x82b   : > { %v1222_v43 = vmul.f32 0.03125, %v1221_v21 }
 0x82d   : > { %v1223_v44 = vadd.f32 1e-05, %v1222_v43 }
 0x82f   : > { %1869 = vrsqrt.f32 %v1223_v44 }
 0x839   : > { %v1870_v45 = vpop.eup %1869 }
 0x83a   : > { %v1225_v47 = vmul.f32 %v1870_v45, %v1217_v35 }
 0x83c   : > { %v1232_v49 = vmul.f32 %v1609_v46, %v1225_v47 }
 0x83e   : > { %v1239_v50 = vadd.f32 %v1610_v48, %v1232_v49 }
 0x840   : > { %v1240_v51 = vpack.c.bf16 %v1239_v50, %v1239_v50 }
 0x842   : > { %1736 = vmatmul.mubr.msk.bf16.vlgmr.msra.gmra.mrb[24].mxu0 %vm526_vm0, %v1240_v51 }
 0x915   : > { %v1301_v58 = vpop.f32.mrb[24].mxu0 }
 0x916   : > { %v1302_v59 = vadd.f32 %v1611_v57, %v1301_v58  ;;  %v1737_v60 = vpop.f32.mrb[25].mxu0 }
 0x917   : > { %v1304_v61 = vpop.f32.mrb[26].mxu0 }
 0x918   : > { %v1308_v62 = vmul.f32 0.70710677, %v1302_v59  ;;  %v1738_v63 = vpop.f32.mrb[27].mxu0  ;;  %v1307_v0 = vmul.f32 0.5, %v1302_v59 }
 0x91a   : > { %1871 = verf.f32 %v1308_v62 }
 0x924   : > { %v1872_v8 = vpop.eup %1871 }
 0x925   : > { %v1310_v1 = vadd.f32 1.0, %v1872_v8 }
 0x927   : > { %v1311_v2 = vmul.f32 %v1310_v1, %v1307_v0 }
 0x929   : > { %v1312_v3 = vpack.c.bf16 %v1311_v2, %v1311_v2 }
 0x92b   : > { %1756 = vmatmul.mubr.bf16.vlgmr.msra.gmra.mrb[16].mxu1 %v1312_v3 }
 0x92c   : > { %1886 = shalt.err (!%p1883_p5)
}
 0x92d   : > { %s1887_s1 = scalar_lea.hbm %s2340_s21, 512  ;;  %s1891_s27 = scalar_lea.hbm %s2439_s14, 1024 }
 0x92e   : > { %p1888_p6 = scmp.ne.s32.totalorder %s2340_s21, %s1887_s1  ;;  %p1892_p10 = scmp.lt.u32.totalorder %s2340_s21, %s2439_s14 }
 0x92f   : > { %p1893_p11 = scmp.lt.u32.totalorder %s1891_s27, %s1887_s1  ;;  %p1895_p13 = scmp.lt.u32.totalorder %s1887_s1, %s2340_s21 }
 0x930   : > { %p1889_p7 = pnand %p1888_p6, %p2120_p4 }
 0x931   : > { %p1894_p12 = por %p1893_p11, %p1892_p10 }
 0x932   : > { %p1890_p9 = pneg %p1889_p7 }
 0x933   : > { %p1896_p0 = por %p1895_p13, %p1894_p12 }
 0x935   : > { %p1897_p1 = pnand %p1896_p0, %p1890_p9 }
 0x937   : > { %1900 = shalt.err (!%p1897_p1)
}
 0x938   : > { %s2003_s2 = smov 128   ;;  %s2461_s24 = smov 8   ;;  %v1615_v4 = vld [vmem:[%s2437_s12] ss:$0 sm:$0xff] }
 0x939   : > { %s2462_s4 = scalar_lea.sflag [#allocation8], %s2209_s28  ;;  %s1587_s19 = sshll.u32 %s2209_s28, 3 }
 0x93a   : > { %1760 = dma.vmem_to_hbm [thread:$0]  (%p2120_p4), %s2334_s22, 512, %s2340_s21, %s2462_s4, %s2003_s2, %s2003_s2, %s2461_s24  }
 0x93b   : > { %s1626_s1 = sshll.u32 %s1975_s16, 7  ;;  %s499_s27 = scalar_lea.vmem [#allocation5], %s1587_s19 }
 0x93c   : > { %s1446_s3 = sshll.u32 %s499_s27, 4  ;;  %s2376_s4 = scalar_lea.hbm %s2438_s13, %s1626_s1  ;;  %s2378_s3 = int_to_ptr.vmem [resolvable:$true] %s1446_s3 }
 0x93d   : > { %s1427_s16 = scalar_lea.sflag [#allocation6], %s2209_s28  ;;  %s1901_s22 = scalar_lea.vmem %s2378_s3, 128 }
 0x93e   : > { %p1902_p2 = scmp.ne.s32.totalorder %s2378_s3, %s1901_s22  ;;  %s2004_s21 = smov [#allocation5]  }
 0x93f   : > { %s1905_s2 = sshll.u32 %s2004_s21, 4  ;;  %s1906_s2 = int_to_ptr.vmem [resolvable:$false] %s1905_s2 }
 0x940   : > { %p1903_p3 = pnand %p1902_p2, %p2120_p4  ;;  %s1907_s24 = scalar_lea.vmem %s1906_s2, 256 }
 0x941   : > { %p1908_p6 = scmp.lt.s32.totalorder %s2378_s3, %s1906_s2  ;;  %p1909_p7 = scmp.lt.s32.totalorder %s1907_s24, %s1901_s22 }
 0x942   : > { %p1904_p5 = pneg %p1903_p3 }
 0x943   : > { %p1910_p9 = por %p1909_p7, %p1908_p6 }
 0x945   : > { %p1911_p10 = pnand %p1910_p9, %p1904_p5 }
 0x9fe   : > { %v1418_v5 = vpop.f32.mrb[16].mxu1 }
 0x9ff   : > { %v1419_v6 = vadd.f32 %v1615_v4, %v1418_v5  ;;  %v1757_v7 = vpop.f32.mrb[17].mxu1 }
 0xa00   : > { %v1421_v9 = vpop.f32.mrb[18].mxu1 }
 0xa01   : > { %v1424_v10 = vadd.f32 %v1419_v6, %v2279_v30  ;;  %v1758_v11 = vpop.f32.mrb[19].mxu1 }
 0xa03   : > { %1425 = vst.msk [vmem:[%s499_s27] sm:$0xff] %vm526_vm0, %v1424_v10 }
 0xa04   : > { %1914 = shalt.err (!%p1911_p10)
}
 0xa05   : > { %s1915_s5 = scalar_lea.hbm %s2376_s4, 128  ;;  %s1919_s19 = scalar_lea.hbm %s2438_s13, 256 }
 0xa06   : > { %p1916_p11 = scmp.ne.s32.totalorder %s2376_s4, %s1915_s5  ;;  %p1920_p0 = scmp.lt.u32.totalorder %s2376_s4, %s2438_s13 }
 0xa07   : > { %p1921_p1 = scmp.lt.u32.totalorder %s1919_s19, %s1915_s5  ;;  %p1923_p3 = scmp.lt.u32.totalorder %s1915_s5, %s2376_s4 }
 0xa08   : > { %p1917_p12 = pnand %p1916_p11, %p2120_p4 }
 0xa09   : > { %p1922_p2 = por %p1921_p1, %p1920_p0 }
 0xa0a   : > { %p1918_p13 = pneg %p1917_p12 }
 0xa0b   : > { %p1924_p5 = por %p1923_p3, %p1922_p2 }
 0xa0d   : > { %p1925_p6 = pnand %p1924_p5, %p1918_p13 }
 0xa0f   : > { %1928 = shalt.err (!%p1925_p6)
}
 0xa10   : > { %1759 = dma.vmem_to_hbm [thread:$0]  (%p2120_p4), %s2378_s3, 128, %s2376_s4, %s1427_s16  }
 0xa11 PF: > { %p1770_p7 = scmp.ge.s32.totalorder %s1983_s18, 2  ;;  %s1475_s1 = sand.u32 1, %s1963_s29  }
 0xa12   : > { %s1476_s27 = scalar_lea.sflag [#allocation6], %s1475_s1 }
 0xa13   : > { %p1764_p9 = pnand %p1770_p7, %p2127_p8 }
 0xa15   : > { %1954 = dma.done.wait (!%p1764_p9), %s1476_s27, 128  }
 0xa16   : > { %1956 = vsyncadd (!%p1764_p9), %s1476_s27, 4294967168  ;;  %s1485_s22 = scalar_lea.sflag [#allocation8], %s1475_s1 }
 0xa17   : > { %1958 = dma.done.wait (!%p1764_p9), %s1485_s22, 512  }
 0xa18   : > { %1960 = vsyncadd (!%p1764_p9), %s1485_s22, 4294966784  ;;  %s31_s18 = sadd.s32 1, %s1983_s18   ;;  %s2463_s23 = sld [smem:[#allocation11_spill]] }
 0xa19   : > { %p28_p10 = scmp.ge.s32.totalorder %s31_s18, 4   ;;  %s2464_s29 = smov %s1967_s30 }
 0xa1a   : > { %s2465_s30 = smov %s1971_s15  ;;  %s2466_s15 = smov %s2133_s26 }
 0xa1b   : > { %s2467_s16 = smov %s1979_s17  ;;  %30 = sbr.rel (!%p28_p10) target bundleno = 14 (0xe), region = 141 }
 0xa1e   : > { %s2468_s17 = smov %s2463_s23 }
 0xa22   :  { %1490 = vsyncpa [#allocation6], 1 }
 0xa23   :  { %1492 = vsyncpa [#allocation6 + $0x1], 1 }
 0xa24   :  { %1493 = vsyncpa [#allocation8], 1 }
 0xa25   :  { %1495 = vsyncpa [#allocation8 + $0x1], 1 }

</bundles_post_ra>
